<compile_context>
chip_gen: v5e
topology: v5e:2x2
jax: 0.10.0
libtpu: 0.0.40
codegen_flags: <defaults>
</compile_context>

<pallas_src>
import jax
import jax.numpy as jnp
from jax.experimental import pallas as pl
from jax.experimental.pallas import tpu as pltpu


def _round_up(v, m):
    return (v + m - 1) // m * m


def _cdiv(a, b):
    return -(-a // b)


def _max_batch_tile():
    """256 fills the v6e/v7x 256-wide MXU; v5e's MXU is 128-wide."""
    try:
        kind = jax.devices()[0].device_kind.lower()
    except Exception:
        return 256
    if "v5" in kind:   # v5e / v5 lite
        return 128
    return 256


def _mlp_heads_kernel(x_ref, w1_ref, b1_ref, w2_ref, b2_ref, wh_ref, bh_ref,
                      out_ref):
    # x tile arrives as f32 (read from HBM once); cast to bf16 in-kernel for the MXU.
    x = x_ref[...].astype(jnp.bfloat16)                               # (tb, obs_p)

    h1 = jnp.dot(x, w1_ref[...], preferred_element_type=jnp.float32)
    h1 = jnp.maximum(h1 + b1_ref[...], 0.0).astype(jnp.bfloat16)      # (tb, h1_p)

    h2 = jnp.dot(h1, w2_ref[...], preferred_element_type=jnp.float32)
    h2 = jnp.maximum(h2 + b2_ref[...], 0.0).astype(jnp.bfloat16)      # (tb, h2_p)

    # Fused mean||log_std head: one MXU pass, one lane-dense (tb, out_p) f32 store.
    out_ref[...] = (
        jnp.dot(h2, wh_ref[...], preferred_element_type=jnp.float32)
        + bh_ref[...]
    )


def prepare_params(params):
    """One-time (load-time) weight prep: pad to lane multiples, cast to bf16, fuse heads.

    Call this ONCE and reuse the result across forward calls — re-doing it per call
    costs more HBM traffic than the fused kernel itself at serving batch sizes.
    """
    w1, b1 = params["w1"], params["b1"]
    w2, b2 = params["w2"], params["b2"]
    wm, bm = params["wm"], params["bm"]
    ws, bs = params["ws"], params["bs"]

    obs_dim, hidden1 = w1.shape
    hidden2 = w2.shape[1]
    acs_dim = wm.shape[1]
    out_dim = 2 * acs_dim

    obs_p = _round_up(obs_dim, 128)
    h1_p = _round_up(hidden1, 128)
    h2_p = _round_up(hidden2, 128)
    out_p = _round_up(out_dim, 128)

    def pad2(a, r, c):
        return jnp.pad(a, ((0, r - a.shape[0]), (0, c - a.shape[1])))

    prepared = dict(
        # bf16 streamed weights (zero padding is inert through matmul + relu).
        w1=pad2(w1, obs_p, h1_p).astype(jnp.bfloat16),
        w2=pad2(w2, h1_p, h2_p).astype(jnp.bfloat16),
        wh=pad2(jnp.concatenate([wm, ws], axis=1), h2_p, out_p).astype(jnp.bfloat16),
        # biases stay f32 (added on the f32 accumulator).
        b1=pad2(b1, 1, h1_p),
        b2=pad2(b2, 1, h2_p),
        bh=pad2(jnp.concatenate([bm, bs], axis=1), 1, out_p),
        # static metadata (python ints).
        obs_dim=obs_dim, acs_dim=acs_dim,
        obs_p=obs_p, h1_p=h1_p, h2_p=h2_p, out_p=out_p,
    )
    return prepared


def tanh_normal_mlp_forward(x, prepared):
    """Fused MLP + two-head forward.

    x: (B, C, H, W) float32 (NCHW like the PyTorch module input)
    prepared: output of prepare_params (padded bf16 weights, f32 biases)
    returns: (means, log_stds), each (B, acs_dim) float32
    """
    B = x.shape[0]
    x_flat = x.reshape(B, -1).astype(jnp.float32)          # torch.flatten(x, 1)
    obs_dim = x_flat.shape[1]
    assert obs_dim == prepared["obs_dim"], "obs_dim mismatch vs prepared params"

    obs_p, h1_p = prepared["obs_p"], prepared["h1_p"]
    h2_p, out_p = prepared["h2_p"], prepared["out_p"]
    acs_dim = prepared["acs_dim"]

    # Balanced, bf16-sublane-aligned (multiple-of-16) batch tiles; no nearly-empty
    # trailing tile. Tiny batches collapse to a single grid step (single TC on v7x).
    max_tile = _max_batch_tile()
    b16 = _round_up(B, 16)
    n_tiles = _cdiv(b16, max_tile)
    tb = _round_up(_cdiv(b16, n_tiles), 16)
    B_p = tb * n_tiles

    # Only x is padded per call (f32, read once by the kernel; no bf16 HBM copy).
    x_p = jnp.pad(x_flat, ((0, B_p - B), (0, obs_p - obs_dim)))

    # VMEM budget from the actual working set (double-buffered), capped at 48 MiB
    # which is safe on v7x's 64 MiB physical VMEM (v5e/v6e have 128 MiB).
    weight_bytes = (obs_p * h1_p + h1_p * h2_p + h2_p * out_p) * 2    # bf16
    bias_bytes = (h1_p + h2_p + out_p) * 4                            # f32
    io_bytes = tb * (obs_p + out_p) * 4                               # f32 x + out tiles
    needed = 2 * (weight_bytes + bias_bytes + io_bytes)
    vmem_limit = min(max(int(needed * 1.3) + (4 << 20), 16 << 20), 48 << 20)

    const = lambda shape: pl.BlockSpec(shape, lambda i: (0, 0))  # VMEM-resident

    out = pl.pallas_call(
        _mlp_heads_kernel,
        out_shape=jax.ShapeDtypeStruct((B_p, out_p), jnp.float32),
        grid=(B_p // tb,),
        in_specs=[
            pl.BlockSpec((tb, obs_p), lambda i: (i, 0)),     # x: tiled over batch
            const((obs_p, h1_p)), const((1, h1_p)),          # layer 1
            const((h1_p, h2_p)), const((1, h2_p)),           # layer 2
            const((h2_p, out_p)), const((1, out_p)),         # fused heads
        ],
        out_specs=pl.BlockSpec((tb, out_p), lambda i: (i, 0)),
        compiler_params=pltpu.CompilerParams(
            dimension_semantics=("parallel",),
            vmem_limit_bytes=vmem_limit,
        ),
    )(x_p, prepared["w1"], prepared["b1"], prepared["w2"], prepared["b2"],
      prepared["wh"], prepared["bh"])

    means = out[:B, :acs_dim]
    log_stds = out[:B, acs_dim:2 * acs_dim]
    return means, log_stds


def init_params(key, obs_dim, acs_dim, hidden1=400, hidden2=300, init_w=0.003):
    """Mimics the PyTorch module's init; weights stored as (in_dim, out_dim)."""
    k = jax.random.split(key, 8)

    def lin(kw, kb, fan_in, fan_out, bound):
        w = jax.random.uniform(kw, (fan_in, fan_out), jnp.float32, -bound, bound)
        b = jax.random.uniform(kb, (1, fan_out), jnp.float32, -bound, bound)
        return w, b

    w1, b1 = lin(k[0], k[1], obs_dim, hidden1, 1.0 / jnp.sqrt(obs_dim))
    w2, b2 = lin(k[2], k[3], hidden1, hidden2, 1.0 / jnp.sqrt(hidden1))
    wm, bm = lin(k[4], k[5], hidden2, acs_dim, init_w)
    ws, bs = lin(k[6], k[7], hidden2, acs_dim, init_w)
    return dict(w1=w1, b1=b1, w2=w2, b2=b2, wm=wm, bm=bm, ws=ws, bs=bs)


if __name__ == "__main__":
    key = jax.random.PRNGKey(0)
    kx, kp = jax.random.split(key)

    # Small shapes: batch=2, NCHW image-like obs (2, 4, 16, 16) -> obs_dim=1024
    B, C, H, W = 2, 4, 16, 16
    obs_dim = C * H * W
    acs_dim = 8

    x = jax.random.normal(kx, (B, C, H, W), jnp.float32)
    params = init_params(kp, obs_dim, acs_dim)

    # Weight prep hoisted out of the per-call path (done once at "load" time).
    prepared = prepare_params(params)
    prepared = jax.tree_util.tree_map(
        lambda v: jax.block_until_ready(v) if isinstance(v, jax.Array) else v,
        prepared)

    fwd = jax.jit(lambda xi: tanh_normal_mlp_forward(xi, prepared))
    means, log_stds = fwd(x)
    jax.block_until_ready((means, log_stds))

    # Reference in plain JAX with the SAME bf16-weight / f32-accumulate recipe.
    xf = x.reshape(B, -1)
    xb = xf.astype(jnp.bfloat16)
    w1b = params["w1"].astype(jnp.bfloat16)
    w2b = params["w2"].astype(jnp.bfloat16)
    wmb = params["wm"].astype(jnp.bfloat16)
    wsb = params["ws"].astype(jnp.bfloat16)

    h1 = jnp.maximum(
        jnp.dot(xb, w1b, preferred_element_type=jnp.float32) + params["b1"], 0.0)
    h1b = h1.astype(jnp.bfloat16)
    h2 = jnp.maximum(
        jnp.dot(h1b, w2b, preferred_element_type=jnp.float32) + params["b2"], 0.0)
    h2b = h2.astype(jnp.bfloat16)
    ref_means = jnp.dot(h2b, wmb, preferred_element_type=jnp.float32) + params["bm"]
    ref_logstds = jnp.dot(h2b, wsb, preferred_element_type=jnp.float32) + params["bs"]

    assert means.shape == (B, acs_dim) and log_stds.shape == (B, acs_dim)
    assert jnp.allclose(means, ref_means, atol=1e-3, rtol=1e-2)
    assert jnp.allclose(log_stds, ref_logstds, atol=1e-3, rtol=1e-2)

    # Also sanity-check against the pure-f32 reference (looser tolerance: bf16 weights).
    h1f = jnp.maximum(xf @ params["w1"] + params["b1"], 0.0)
    h2f = jnp.maximum(h1f @ params["w2"] + params["b2"], 0.0)
    assert jnp.allclose(means, h2f @ params["wm"] + params["bm"], atol=5e-2, rtol=5e-2)
    assert jnp.allclose(log_stds, h2f @ params["ws"] + params["bs"], atol=5e-2, rtol=5e-2)

    print("KERNEL_OK")
</pallas_src>

<mosaic_0001>
module attributes {stable_mosaic.version = 11 : i64} {
  func.func @_mlp_heads_kernel(%arg0: i32, %arg1: memref<16x1024xf32, #tpu.memory_space<vmem>>, %arg2: memref<1024x512xbf16, #tpu.memory_space<vmem>>, %arg3: memref<1x512xf32, #tpu.memory_space<vmem>>, %arg4: memref<512x384xbf16, #tpu.memory_space<vmem>>, %arg5: memref<1x384xf32, #tpu.memory_space<vmem>>, %arg6: memref<384x128xbf16, #tpu.memory_space<vmem>>, %arg7: memref<1x128xf32, #tpu.memory_space<vmem>>, %arg8: memref<16x128xf32, #tpu.memory_space<vmem>>) attributes {dimension_semantics = [#tpu.dimension_semantics<parallel>], iteration_bounds = array<i64: 1>, scalar_prefetch = 0 : i64, scratch_operands = 0 : i64, tpu.core_type = #tpu.core_type<tc>, window_params = [{transform_indices = @transform_0, window_bounds = array<i64: 16, 1024>}, {pipeline_mode = #tpu.pipeline_mode<synchronous>, transform_indices = @transform_1, window_bounds = array<i64: 1024, 512>}, {pipeline_mode = #tpu.pipeline_mode<synchronous>, transform_indices = @transform_2, window_bounds = array<i64: 1, 512>}, {pipeline_mode = #tpu.pipeline_mode<synchronous>, transform_indices = @transform_3, window_bounds = array<i64: 512, 384>}, {pipeline_mode = #tpu.pipeline_mode<synchronous>, transform_indices = @transform_4, window_bounds = array<i64: 1, 384>}, {pipeline_mode = #tpu.pipeline_mode<synchronous>, transform_indices = @transform_5, window_bounds = array<i64: 384, 128>}, {pipeline_mode = #tpu.pipeline_mode<synchronous>, transform_indices = @transform_6, window_bounds = array<i64: 1, 128>}, {transform_indices = @transform_7, window_bounds = array<i64: 16, 128>}]} {
    %c0 = arith.constant 0 : index
    %c0_0 = arith.constant 0 : index
    %0 = vector.load %arg1[%c0, %c0_0] : memref<16x1024xf32, #tpu.memory_space<vmem>>, vector<16x1024xf32>
    %1 = arith.truncf %0 : vector<16x1024xf32> to vector<16x1024xbf16>
    %c0_1 = arith.constant 0 : index
    %c0_2 = arith.constant 0 : index
    %2 = vector.load %arg2[%c0_1, %c0_2] : memref<1024x512xbf16, #tpu.memory_space<vmem>>, vector<1024x512xbf16>
    %cst = arith.constant dense<0.000000e+00> : vector<16x512xf32>
    %3 = tpu.matmul %1, %2, %cst {dimension_numbers = #tpu.dot_dimension_numbers<[1], [0], [0], [1], [0, 0, 1, 1], [], []>} : vector<16x1024xbf16>, vector<1024x512xbf16>, vector<16x512xf32> -> vector<16x512xf32>
    %c0_3 = arith.constant 0 : index
    %c0_4 = arith.constant 0 : index
    %4 = vector.load %arg3[%c0_3, %c0_4] : memref<1x512xf32, #tpu.memory_space<vmem>>, vector<1x512xf32>
    %5 = vector.broadcast %4 : vector<1x512xf32> to vector<16x512xf32>
    %6 = arith.addf %3, %5 : vector<16x512xf32>
    %cst_5 = arith.constant 0.000000e+00 : f32
    %7 = vector.broadcast %cst_5 : f32 to vector<16x512xf32>
    %8 = arith.maximumf %6, %7 : vector<16x512xf32>
    %9 = arith.truncf %8 : vector<16x512xf32> to vector<16x512xbf16>
    %c0_6 = arith.constant 0 : index
    %c0_7 = arith.constant 0 : index
    %10 = vector.load %arg4[%c0_6, %c0_7] : memref<512x384xbf16, #tpu.memory_space<vmem>>, vector<512x384xbf16>
    %cst_8 = arith.constant dense<0.000000e+00> : vector<16x384xf32>
    %11 = tpu.matmul %9, %10, %cst_8 {dimension_numbers = #tpu.dot_dimension_numbers<[1], [0], [0], [1], [0, 0, 1, 1], [], []>} : vector<16x512xbf16>, vector<512x384xbf16>, vector<16x384xf32> -> vector<16x384xf32>
    %c0_9 = arith.constant 0 : index
    %c0_10 = arith.constant 0 : index
    %12 = vector.load %arg5[%c0_9, %c0_10] : memref<1x384xf32, #tpu.memory_space<vmem>>, vector<1x384xf32>
    %13 = vector.broadcast %12 : vector<1x384xf32> to vector<16x384xf32>
    %14 = arith.addf %11, %13 : vector<16x384xf32>
    %cst_11 = arith.constant 0.000000e+00 : f32
    %15 = vector.broadcast %cst_11 : f32 to vector<16x384xf32>
    %16 = arith.maximumf %14, %15 : vector<16x384xf32>
    %17 = arith.truncf %16 : vector<16x384xf32> to vector<16x384xbf16>
    %c0_12 = arith.constant 0 : index
    %c0_13 = arith.constant 0 : index
    %18 = vector.load %arg6[%c0_12, %c0_13] : memref<384x128xbf16, #tpu.memory_space<vmem>>, vector<384x128xbf16>
    %cst_14 = arith.constant dense<0.000000e+00> : vector<16x128xf32>
    %19 = tpu.matmul %17, %18, %cst_14 {dimension_numbers = #tpu.dot_dimension_numbers<[1], [0], [0], [1], [0, 0, 1, 1], [], []>} : vector<16x384xbf16>, vector<384x128xbf16>, vector<16x128xf32> -> vector<16x128xf32>
    %c0_15 = arith.constant 0 : index
    %c0_16 = arith.constant 0 : index
    %20 = vector.load %arg7[%c0_15, %c0_16] : memref<1x128xf32, #tpu.memory_space<vmem>>, vector<1x128xf32>
    %21 = vector.broadcast %20 : vector<1x128xf32> to vector<16x128xf32>
    %22 = arith.addf %19, %21 : vector<16x128xf32>
    %c0_17 = arith.constant 0 : index
    %c0_18 = arith.constant 0 : index
    %23 = vector.load %arg8[%c0_17, %c0_18] : memref<16x128xf32, #tpu.memory_space<vmem>>, vector<16x128xf32>
    tpu.vector_store %arg8[%c0_17, %c0_18], %22 {strides = array<i32>} : memref<16x128xf32, #tpu.memory_space<vmem>>, vector<16x128xf32>,
    return
  }
  func.func @transform_0(%arg0: i32) -> (i32, i32) {
    %c0_i32 = arith.constant 0 : i32
    %c0_i32_0 = arith.constant 0 : i32
    return %arg0, %c0_i32 : i32, i32
  }
  func.func @transform_1(%arg0: i32) -> (i32, i32) {
    %c0_i32 = arith.constant 0 : i32
    %c0_i32_0 = arith.constant 0 : i32
    %c0_i32_1 = arith.constant 0 : i32
    return %c0_i32, %c0_i32_0 : i32, i32
  }
  func.func @transform_2(%arg0: i32) -> (i32, i32) {
    %c0_i32 = arith.constant 0 : i32
    %c0_i32_0 = arith.constant 0 : i32
    %c0_i32_1 = arith.constant 0 : i32
    return %c0_i32, %c0_i32_0 : i32, i32
  }
  func.func @transform_3(%arg0: i32) -> (i32, i32) {
    %c0_i32 = arith.constant 0 : i32
    %c0_i32_0 = arith.constant 0 : i32
    %c0_i32_1 = arith.constant 0 : i32
    return %c0_i32, %c0_i32_0 : i32, i32
  }
  func.func @transform_4(%arg0: i32) -> (i32, i32) {
    %c0_i32 = arith.constant 0 : i32
    %c0_i32_0 = arith.constant 0 : i32
    %c0_i32_1 = arith.constant 0 : i32
    return %c0_i32, %c0_i32_0 : i32, i32
  }
  func.func @transform_5(%arg0: i32) -> (i32, i32) {
    %c0_i32 = arith.constant 0 : i32
    %c0_i32_0 = arith.constant 0 : i32
    %c0_i32_1 = arith.constant 0 : i32
    return %c0_i32, %c0_i32_0 : i32, i32
  }
  func.func @transform_6(%arg0: i32) -> (i32, i32) {
    %c0_i32 = arith.constant 0 : i32
    %c0_i32_0 = arith.constant 0 : i32
    %c0_i32_1 = arith.constant 0 : i32
    return %c0_i32, %c0_i32_0 : i32, i32
  }
  func.func @transform_7(%arg0: i32) -> (i32, i32) {
    %c0_i32 = arith.constant 0 : i32
    %c0_i32_0 = arith.constant 0 : i32
    return %arg0, %c0_i32 : i32, i32
  }
}

</mosaic_0001>

<bundles_post_ra>
// kernel: _lambda_.1
= control target key start
LH: loop header
LB: loop body
LE: loop exit
PB: predicated region body
PF: predicated region fallthrough
CT: control target
= control target key end

     0   :  { %12 = vsyncpa [#allocation3], 0  ;;  %s5402_s0 = inlined_call_operand.vmem [shape: f32[16,1024], index: 0, kind: input, shape index: {}]   ;;  %s5403_s1 = inlined_call_operand.hbm [shape: bf16[1024,512], index: 1, kind: input, shape index: {}]   ;;  %s5404_s2 = inlined_call_operand.vmem [shape: f32[1,512], index: 2, kind: input, shape index: {}]   ;;  %s5405_s3 = inlined_call_operand.hbm [shape: bf16[512,384], index: 3, kind: input, shape index: {}]   ;;  %s5406_s4 = inlined_call_operand.vmem [shape: f32[1,384], index: 4, kind: input, shape index: {}]   ;;  %s5407_s5 = inlined_call_operand.vmem [shape: bf16[384,128], index: 5, kind: input, shape index: {}]   ;;  %s5408_s6 = inlined_call_operand.vmem [shape: f32[1,128], index: 6, kind: input, shape index: {}]   ;;  %s5409_s7 = inlined_call_operand.vmem [shape: f32[16,128], index: 7, kind: output, shape index: {}]  }
   0x1   :  { %s20_s26 = sshll.u32 %s5403_s1, 4  ;;  %s21_s26 = int_to_ptr.hbm [resolvable:$true] %s20_s26 }
   0x2   :  { %13 = vsyncpa [#allocation5], 0  ;;  %s5098_s27 = smov [#allocation2]   ;;  %s35_s8 = sshll.u32 %s5405_s3, 4  ;;  %s36_s8 = int_to_ptr.hbm [resolvable:$true] %s35_s8 }
   0x3   :  { %s22_s28 = sshll.u32 %s5098_s27, 4  ;;  %s5099_s9 = smov 256   ;;  %s23_s28 = int_to_ptr.vmem [resolvable:$true] %s22_s28 }
   0x4   :  { %s5100_s10 = smov 16   ;;  %s5101_s11 = smov [#allocation4]  }
   0x5   :  { %28 = dma.hbm_to_vmem [thread:$0]  %s21_s26, 32768, %s23_s28, [#allocation3], %s5099_s9, %s5099_s9, %s5100_s10  }
   0x6   :  { %s37_s12 = sshll.u32 %s5101_s11, 4  ;;  %s5102_s13 = smov 192   ;;  %s38_s12 = int_to_ptr.vmem [resolvable:$true] %s37_s12 }
   0x7   :  { %s5103_s14 = smov 12  }
   0x8   :  { %43 = dma.hbm_to_vmem [thread:$0]  %s36_s8, 12288, %s38_s12, [#allocation5], %s5102_s13, %s5102_s13, %s5103_s14  }
   0x9   :  { %5094 = dma.done.wait [#allocation3], 32768  }
   0xa   :  { %5095 = vsyncadd [#allocation3], 4294934528 }
   0xb   :  { %5096 = dma.done.wait [#allocation5], 12288  }
   0xc   :  { %5097 = vsyncadd [#allocation5], 4294955008  ;;  %v3273_v0 = vld [vmem:[#allocation2 + $0xe0] sm:$0xf]  ;;  %v4693_v1 = vld [vmem:[#allocation2 + $0xec] sm:$0xf0] }
   0xd   :  { %v3401_v2 = vld [vmem:[#allocation2 + $0x1e0] sm:$0xf]  ;;  %v3274_v3 = vor.u32 %v4693_v1, %v3273_v0  ;;  %v4725_v4 = vld [vmem:[#allocation2 + $0x1ec] sm:$0xf0] }
   0xe   :  { %v3529_v5 = vld [vmem:[#allocation2 + $0x2e0] sm:$0xf]  ;;  %v4757_v6 = vld [vmem:[#allocation2 + $0x2ec] sm:$0xf0]  ;;  %v3402_v7 = vor.u32 %v4725_v4, %v3401_v2 }
   0xf   :  { %v3530_v8 = vor.u32 %v4757_v6, %v3529_v5  ;;  %v3657_v9 = vld [vmem:[#allocation2 + $0x3e0] sm:$0xf]  ;;  %v4789_v10 = vld [vmem:[#allocation2 + $0x3ec] sm:$0xf0]  ;;  %1628 = vmatpush.bf16.msra.mxu0 %v3274_v3 }
  0x10   :  { %v3257_v11 = vld [vmem:[#allocation2 + $0xc0] sm:$0xf]  ;;  %v3658_v12 = vor.u32 %v4789_v10, %v3657_v9  ;;  %v4689_v13 = vld [vmem:[#allocation2 + $0xcc] sm:$0xf0]  ;;  %1642 = vmatpush.bf16.msra.mxu1 %v3402_v7 }
  0x11   :  { %v3385_v14 = vld [vmem:[#allocation2 + $0x1c0] sm:$0xf]  ;;  %v4721_v15 = vld [vmem:[#allocation2 + $0x1cc] sm:$0xf0]  ;;  %1656 = vmatpush.bf16.msra.mxu2 %v3530_v8  ;;  %v3258_v16 = vor.u32 %v4689_v13, %v3257_v11 }
  0x12   :  { %v3386_v17 = vor.u32 %v4721_v15, %v3385_v14  ;;  %v3513_v18 = vld [vmem:[#allocation2 + $0x2c0] sm:$0xf]  ;;  %v4753_v19 = vld [vmem:[#allocation2 + $0x2cc] sm:$0xf0]  ;;  %1670 = vmatpush.bf16.msra.mxu3 %v3658_v12 }
  0x13   :  { %v3641_v20 = vld [vmem:[#allocation2 + $0x3c0] sm:$0xf]  ;;  %v3514_v21 = vor.u32 %v4753_v19, %v3513_v18  ;;  %v4785_v22 = vld [vmem:[#allocation2 + $0x3cc] sm:$0xf0]  ;;  %1629 = vmatpush.bf16.msra.mxu0 %v3258_v16 }
  0x14   :  { %v3241_v23 = vld [vmem:[#allocation2 + $0xa0] sm:$0xf]  ;;  %v4685_v24 = vld [vmem:[#allocation2 + $0xac] sm:$0xf0]  ;;  %v3642_v25 = vor.u32 %v4785_v22, %v3641_v20  ;;  %1643 = vmatpush.bf16.msra.mxu1 %v3386_v17 }
  0x15   :  { %v3369_v26 = vld [vmem:[#allocation2 + $0x1a0] sm:$0xf]  ;;  %v4717_v27 = vld [vmem:[#allocation2 + $0x1ac] sm:$0xf0]  ;;  %v3242_v29 = vor.u32 %v4685_v24, %v3241_v23  ;;  %1657 = vmatpush.bf16.msra.mxu2 %v3514_v21 }
  0x16   :  { %v3497_v28 = vld [vmem:[#allocation2 + $0x2a0] sm:$0xf]  ;;  %v4749_v30 = vld [vmem:[#allocation2 + $0x2ac] sm:$0xf0]  ;;  %v3370_v33 = vor.u32 %v4717_v27, %v3369_v26  ;;  %1671 = vmatpush.bf16.msra.mxu3 %v3642_v25 }
  0x17   :  { %v3625_v31 = vld [vmem:[#allocation2 + $0x3a0] sm:$0xf]  ;;  %v4781_v32 = vld [vmem:[#allocation2 + $0x3ac] sm:$0xf0]  ;;  %v3498_v34 = vor.u32 %v4749_v30, %v3497_v28  ;;  %1630 = vmatpush.bf16.msra.mxu0 %v3242_v29 }
  0x18   :  { %v3225_v35 = vld [vmem:[#allocation2 + $0x80] sm:$0xf]  ;;  %v4681_v36 = vld [vmem:[#allocation2 + $0x8c] sm:$0xf0]  ;;  %v3626_v38 = vor.u32 %v4781_v32, %v3625_v31  ;;  %1644 = vmatpush.bf16.msra.mxu1 %v3370_v33 }
  0x19   :  { %v3353_v37 = vld [vmem:[#allocation2 + $0x180] sm:$0xf]  ;;  %v4713_v39 = vld [vmem:[#allocation2 + $0x18c] sm:$0xf0]  ;;  %v3226_v44 = vor.u32 %v4681_v36, %v3225_v35  ;;  %1658 = vmatpush.bf16.msra.mxu2 %v3498_v34 }
  0x1a   :  { %v3481_v40 = vld [vmem:[#allocation2 + $0x280] sm:$0xf]  ;;  %v4745_v41 = vld [vmem:[#allocation2 + $0x28c] sm:$0xf0]  ;;  %v3354_v45 = vor.u32 %v4713_v39, %v3353_v37  ;;  %1672 = vmatpush.bf16.msra.mxu3 %v3626_v38 }
  0x1b   :  { %v3609_v42 = vld [vmem:[#allocation2 + $0x380] sm:$0xf]  ;;  %v4777_v43 = vld [vmem:[#allocation2 + $0x38c] sm:$0xf0]  ;;  %v3482_v46 = vor.u32 %v4745_v41, %v3481_v40  ;;  %1631 = vmatpush.bf16.msra.mxu0 %v3226_v44 }
  0x1c   :  { %v3209_v47 = vld [vmem:[#allocation2 + $0x60] sm:$0xf]  ;;  %v4677_v48 = vld [vmem:[#allocation2 + $0x6c] sm:$0xf0]  ;;  %v3610_v50 = vor.u32 %v4777_v43, %v3609_v42  ;;  %1645 = vmatpush.bf16.msra.mxu1 %v3354_v45 }
  0x1d   :  { %v3337_v49 = vld [vmem:[#allocation2 + $0x160] sm:$0xf]  ;;  %v4709_v51 = vld [vmem:[#allocation2 + $0x16c] sm:$0xf0]  ;;  %v3210_v56 = vor.u32 %v4677_v48, %v3209_v47  ;;  %1659 = vmatpush.bf16.msra.mxu2 %v3482_v46 }
  0x1e   :  { %v3465_v52 = vld [vmem:[#allocation2 + $0x260] sm:$0xf]  ;;  %v4741_v53 = vld [vmem:[#allocation2 + $0x26c] sm:$0xf0]  ;;  %v3338_v57 = vor.u32 %v4709_v51, %v3337_v49  ;;  %1673 = vmatpush.bf16.msra.mxu3 %v3610_v50 }
  0x1f   :  { %v3593_v54 = vld [vmem:[#allocation2 + $0x360] sm:$0xf]  ;;  %v4773_v55 = vld [vmem:[#allocation2 + $0x36c] sm:$0xf0]  ;;  %v3466_v58 = vor.u32 %v4741_v53, %v3465_v52  ;;  %1632 = vmatpush.bf16.msra.mxu0 %v3210_v56 }
  0x20   :  { %v3193_v59 = vld [vmem:[#allocation2 + $0x40] sm:$0xf]  ;;  %v4673_v60 = vld [vmem:[#allocation2 + $0x4c] sm:$0xf0]  ;;  %v3594_v62 = vor.u32 %v4773_v55, %v3593_v54  ;;  %1646 = vmatpush.bf16.msra.mxu1 %v3338_v57 }
  0x21   :  { %v3321_v61 = vld [vmem:[#allocation2 + $0x140] sm:$0xf]  ;;  %v4705_v63 = vld [vmem:[#allocation2 + $0x14c] sm:$0xf0]  ;;  %v3194_v4 = vor.u32 %v4673_v60, %v3193_v59  ;;  %1660 = vmatpush.bf16.msra.mxu2 %v3466_v58 }
  0x22   :  { %v3449_v0 = vld [vmem:[#allocation2 + $0x240] sm:$0xf]  ;;  %v4737_v1 = vld [vmem:[#allocation2 + $0x24c] sm:$0xf0]  ;;  %v3322_v5 = vor.u32 %v4705_v63, %v3321_v61  ;;  %1674 = vmatpush.bf16.msra.mxu3 %v3594_v62 }
  0x23   :  { %v3577_v2 = vld [vmem:[#allocation2 + $0x340] sm:$0xf]  ;;  %v4769_v3 = vld [vmem:[#allocation2 + $0x34c] sm:$0xf0]  ;;  %v3450_v6 = vor.u32 %v4737_v1, %v3449_v0  ;;  %1633 = vmatpush.bf16.msra.mxu0 %v3194_v4 }
  0x24   :  { %v3177_v7 = vld [vmem:[#allocation2 + $0x20] sm:$0xf]  ;;  %v4669_v8 = vld [vmem:[#allocation2 + $0x2c] sm:$0xf0]  ;;  %v3578_v10 = vor.u32 %v4769_v3, %v3577_v2  ;;  %1647 = vmatpush.bf16.msra.mxu1 %v3322_v5 }
  0x25   :  { %v3305_v9 = vld [vmem:[#allocation2 + $0x120] sm:$0xf]  ;;  %v4701_v11 = vld [vmem:[#allocation2 + $0x12c] sm:$0xf0]  ;;  %v3178_v16 = vor.u32 %v4669_v8, %v3177_v7  ;;  %1661 = vmatpush.bf16.msra.mxu2 %v3450_v6  ;;  %v59_v6 = vld [vmem:[%s5402_s0 + $0x8] sm:$0xff] }
  0x26   :  { %v3433_v12 = vld [vmem:[#allocation2 + $0x220] sm:$0xf]  ;;  %v4733_v13 = vld [vmem:[#allocation2 + $0x22c] sm:$0xf0]  ;;  %v3306_v19 = vor.u32 %v4701_v11, %v3305_v9  ;;  %1675 = vmatpush.bf16.msra.mxu3 %v3578_v10  ;;  %v67_v7 = vld [vmem:[%s5402_s0 + $0x48] sm:$0xff] }
  0x27   :  { %v3561_v14 = vld [vmem:[#allocation2 + $0x320] sm:$0xf]  ;;  %v4765_v15 = vld [vmem:[#allocation2 + $0x32c] sm:$0xf0]  ;;  %v3434_v20 = vor.u32 %v4733_v13, %v3433_v12  ;;  %1634 = vmatpush.bf16.msra.mxu0 %v3178_v16  ;;  %v61_v8 = vld [vmem:[%s5402_s0 + $0x18] sm:$0xff]  ;;  %v5177_v10 = vpack.c.bf16 %v67_v7, %v59_v6 }
  0x28   :  { %v3161_v17 = vld [vmem:[#allocation2] sm:$0xf]  ;;  %v4665_v18 = vld [vmem:[#allocation2 + $0xc] sm:$0xf0]  ;;  %v3562_v24 = vor.u32 %v4765_v15, %v3561_v14  ;;  %1648 = vmatpush.bf16.msra.mxu1 %v3306_v19  ;;  %v69_v11 = vld [vmem:[%s5402_s0 + $0x58] sm:$0xff] }
  0x29   :  { %v3289_v21 = vld [vmem:[#allocation2 + $0x100] sm:$0xf]  ;;  %v4697_v22 = vld [vmem:[#allocation2 + $0x10c] sm:$0xf0]  ;;  %v3162_v31 = vor.u32 %v4665_v18, %v3161_v17  ;;  %1662 = vmatpush.bf16.msra.mxu2 %v3434_v20  ;;  %v5182_v17 = vpack.c.bf16 %v69_v11, %v61_v8 }
  0x2a   :  { %v3417_v23 = vld [vmem:[#allocation2 + $0x200] sm:$0xf]  ;;  %v4729_v25 = vld [vmem:[#allocation2 + $0x20c] sm:$0xf0]  ;;  %v3290_v35 = vor.u32 %v4697_v22, %v3289_v21  ;;  %1676 = vmatpush.bf16.msra.mxu3 %v3562_v24 }
  0x2b   :  { %v3545_v26 = vld [vmem:[#allocation2 + $0x300] sm:$0xf]  ;;  %v4761_v27 = vld [vmem:[#allocation2 + $0x30c] sm:$0xf0]  ;;  %v3418_v36 = vor.u32 %v4729_v25, %v3417_v23  ;;  %1635 = vmatpush.bf16.msra.mxu0 %v3162_v31 }
  0x2c   :  { %v3785_v28 = vld [vmem:[#allocation2 + $0x4e0] sm:$0xf]  ;;  %v4821_v29 = vld [vmem:[#allocation2 + $0x4ec] sm:$0xf0]  ;;  %v3546_v39 = vor.u32 %v4761_v27, %v3545_v26  ;;  %1649 = vmatpush.bf16.msra.mxu1 %v3290_v35 }
  0x2d   :  { %v3913_v30 = vld [vmem:[#allocation2 + $0x5e0] sm:$0xf]  ;;  %v4853_v32 = vld [vmem:[#allocation2 + $0x5ec] sm:$0xf0]  ;;  %v3786_v40 = vor.u32 %v4821_v29, %v3785_v28  ;;  %1663 = vmatpush.bf16.msra.mxu2 %v3418_v36 }
  0x2e   :  { %v4041_v33 = vld [vmem:[#allocation2 + $0x6e0] sm:$0xf]  ;;  %v4885_v34 = vld [vmem:[#allocation2 + $0x6ec] sm:$0xf0]  ;;  %v3914_v43 = vor.u32 %v4853_v32, %v3913_v30  ;;  %1677 = vmatpush.bf16.msra.mxu3 %v3546_v39 }
  0x2f   :  { %v4169_v37 = vld [vmem:[#allocation2 + $0x7e0] sm:$0xf]  ;;  %v4917_v38 = vld [vmem:[#allocation2 + $0x7ec] sm:$0xf0]  ;;  %v4042_v44 = vor.u32 %v4885_v34, %v4041_v33  ;;  %1684 = vmatpush.bf16.msrb.mxu0 %v3786_v40  ;;  %1650 = vmatmul.bf16.vlgmr.msra.gmra.mxu1 %v5177_v10 }
  0x30   :  { %v3769_v41 = vld [vmem:[#allocation2 + $0x4c0] sm:$0xf]  ;;  %v4817_v42 = vld [vmem:[#allocation2 + $0x4cc] sm:$0xf0]  ;;  %v4170_v48 = vor.u32 %v4917_v38, %v4169_v37  ;;  %1698 = vmatpush.bf16.msrb.mxu1 %v3914_v43 }
  0x31   :  { %v3897_v45 = vld [vmem:[#allocation2 + $0x5c0] sm:$0xf]  ;;  %v4849_v46 = vld [vmem:[#allocation2 + $0x5cc] sm:$0xf0]  ;;  %v3770_v55 = vor.u32 %v4817_v42, %v3769_v41  ;;  %1712 = vmatpush.bf16.msrb.mxu2 %v4042_v44  ;;  %1678 = vmatmul.bf16.vlgmr.msra.gmra.mxu3 %v5182_v17 }
  0x32   :  { %v4025_v47 = vld [vmem:[#allocation2 + $0x6c0] sm:$0xf]  ;;  %v4881_v49 = vld [vmem:[#allocation2 + $0x6cc] sm:$0xf0]  ;;  %v3898_v60 = vor.u32 %v4849_v46, %v3897_v45  ;;  %1726 = vmatpush.bf16.msrb.mxu3 %v4170_v48 }
  0x33   :  { %v4153_v50 = vld [vmem:[#allocation2 + $0x7c0] sm:$0xf]  ;;  %v4913_v51 = vld [vmem:[#allocation2 + $0x7cc] sm:$0xf0]  ;;  %v4026_v61 = vor.u32 %v4881_v49, %v4025_v47  ;;  %1685 = vmatpush.bf16.msrb.mxu0 %v3770_v55 }
  0x34   :  { %v58_v52 = vld [vmem:[%s5402_s0] sm:$0xff]  ;;  %v60_v54 = vld [vmem:[%s5402_s0 + $0x10] sm:$0xff]  ;;  %v4154_v2 = vor.u32 %v4913_v51, %v4153_v50  ;;  %1699 = vmatpush.bf16.msrb.mxu1 %v3898_v60 }
  0x35   :  { %v66_v53 = vld [vmem:[%s5402_s0 + $0x40] sm:$0xff]  ;;  %v4813_v57 = vld [vmem:[#allocation2 + $0x4ac] sm:$0xf0]  ;;  %1713 = vmatpush.bf16.msrb.mxu2 %v4026_v61 }
  0x36   :  { %v3753_v56 = vld [vmem:[#allocation2 + $0x4a0] sm:$0xf]  ;;  %v5159_v58 = vpack.c.bf16 %v66_v53, %v58_v52  ;;  %v68_v59 = vld [vmem:[%s5402_s0 + $0x50] sm:$0xff]  ;;  %1727 = vmatpush.bf16.msrb.mxu3 %v4154_v2 }
  0x37   :  { %v3881_v62 = vld [vmem:[#allocation2 + $0x5a0] sm:$0xf]  ;;  %v4845_v63 = vld [vmem:[#allocation2 + $0x5ac] sm:$0xf0]  ;;  %v5164_v1 = vpack.c.bf16 %v68_v59, %v60_v54  ;;  %v3754_v9 = vor.u32 %v4813_v57, %v3753_v56 }
  0x38   :  { %v4009_v0 = vld [vmem:[#allocation2 + $0x6a0] sm:$0xf]  ;;  %v4877_v3 = vld [vmem:[#allocation2 + $0x6ac] sm:$0xf0]  ;;  %1636 = vmatmul.bf16.vlgmr.msra.gmra.mxu0 %v5159_v58  ;;  %v3882_v12 = vor.u32 %v4845_v63, %v3881_v62 }
  0x39   :  { %v4137_v4 = vld [vmem:[#allocation2 + $0x7a0] sm:$0xf]  ;;  %v4909_v5 = vld [vmem:[#allocation2 + $0x7ac] sm:$0xf0]  ;;  %1664 = vmatmul.bf16.vlgmr.msra.gmra.mxu2 %v5164_v1  ;;  %v4010_v13 = vor.u32 %v4877_v3, %v4009_v0  ;;  %1686 = vmatpush.bf16.msrb.mxu0 %v3754_v9  ;;  %v4691_v9 = vld [vmem:[#allocation2 + $0xe4] sm:$0xf] }
  0x3a   :  { %v3737_v14 = vld [vmem:[#allocation2 + $0x480] sm:$0xf]  ;;  %v4809_v15 = vld [vmem:[#allocation2 + $0x48c] sm:$0xf0]  ;;  %v4138_v18 = vor.u32 %v4909_v5, %v4137_v4  ;;  %1700 = vmatpush.bf16.msrb.mxu1 %v3882_v12  ;;  %v3275_v12 = vld [vmem:[#allocation2 + $0xf0] sm:$0xf0] }
  0x3b   :  { %v3865_v16 = vld [vmem:[#allocation2 + $0x580] sm:$0xf]  ;;  %v4841_v19 = vld [vmem:[#allocation2 + $0x58c] sm:$0xf0]  ;;  %v3738_v24 = vor.u32 %v4809_v15, %v3737_v14  ;;  %1714 = vmatpush.bf16.msrb.mxu2 %v4010_v13  ;;  %v4723_v13 = vld [vmem:[#allocation2 + $0x1e4] sm:$0xf] }
  0x3c   :  { %v3993_v20 = vld [vmem:[#allocation2 + $0x680] sm:$0xf]  ;;  %v4873_v21 = vld [vmem:[#allocation2 + $0x68c] sm:$0xf0]  ;;  %v3866_v25 = vor.u32 %v4841_v19, %v3865_v16  ;;  %1728 = vmatpush.bf16.msrb.mxu3 %v4138_v18  ;;  %v3403_v14 = vld [vmem:[#allocation2 + $0x1f0] sm:$0xf0] }
  0x3d   :  { %v4121_v22 = vld [vmem:[#allocation2 + $0x780] sm:$0xf]  ;;  %v4905_v23 = vld [vmem:[#allocation2 + $0x78c] sm:$0xf0]  ;;  %v3994_v26 = vor.u32 %v4873_v21, %v3993_v20  ;;  %1687 = vmatpush.bf16.msrb.mxu0 %v3738_v24  ;;  %v4755_v15 = vld [vmem:[#allocation2 + $0x2e4] sm:$0xf] }
  0x3e   :  { %v3721_v27 = vld [vmem:[#allocation2 + $0x460] sm:$0xf]  ;;  %v4805_v28 = vld [vmem:[#allocation2 + $0x46c] sm:$0xf0]  ;;  %v4122_v30 = vor.u32 %v4905_v23, %v4121_v22  ;;  %1701 = vmatpush.bf16.msrb.mxu1 %v3866_v25  ;;  %v3531_v16 = vld [vmem:[#allocation2 + $0x2f0] sm:$0xf0] }
  0x3f   :  { %v3849_v29 = vld [vmem:[#allocation2 + $0x560] sm:$0xf]  ;;  %v4837_v31 = vld [vmem:[#allocation2 + $0x56c] sm:$0xf0]  ;;  %v3722_v36 = vor.u32 %v4805_v28, %v3721_v27  ;;  %1715 = vmatpush.bf16.msrb.mxu2 %v3994_v26  ;;  %v4787_v18 = vld [vmem:[#allocation2 + $0x3e4] sm:$0xf] }
  0x40   :  { %v3977_v32 = vld [vmem:[#allocation2 + $0x660] sm:$0xf]  ;;  %v4869_v33 = vld [vmem:[#allocation2 + $0x66c] sm:$0xf0]  ;;  %v3850_v37 = vor.u32 %v4837_v31, %v3849_v29  ;;  %1729 = vmatpush.bf16.msrb.mxu3 %v4122_v30  ;;  %v3659_v20 = vld [vmem:[#allocation2 + $0x3f0] sm:$0xf0]  ;;  %v3278_v29 = vor.u32 %v4691_v9, %v3275_v12 }
  0x41   :  { %v4105_v34 = vld [vmem:[#allocation2 + $0x760] sm:$0xf]  ;;  %v4901_v35 = vld [vmem:[#allocation2 + $0x76c] sm:$0xf0]  ;;  %v3978_v38 = vor.u32 %v4869_v33, %v3977_v32  ;;  %1688 = vmatpush.bf16.msrb.mxu0 %v3722_v36  ;;  %v63_v27 = vld [vmem:[%s5402_s0 + $0x28] sm:$0xff]  ;;  %v3406_v33 = vor.u32 %v4723_v13, %v3403_v14 }
  0x42   :  { %v3705_v39 = vld [vmem:[#allocation2 + $0x440] sm:$0xf]  ;;  %v4801_v40 = vld [vmem:[#allocation2 + $0x44c] sm:$0xf0]  ;;  %v4106_v42 = vor.u32 %v4901_v35, %v4105_v34  ;;  %1702 = vmatpush.bf16.msrb.mxu1 %v3850_v37  ;;  %v71_v30 = vld [vmem:[%s5402_s0 + $0x68] sm:$0xff]  ;;  %v3534_v34 = vor.u32 %v4755_v15, %v3531_v16 }
  0x43   :  { %v3833_v41 = vld [vmem:[#allocation2 + $0x540] sm:$0xf]  ;;  %v4833_v43 = vld [vmem:[#allocation2 + $0x54c] sm:$0xf0]  ;;  %v3706_v48 = vor.u32 %v4801_v40, %v3705_v39  ;;  %1716 = vmatpush.bf16.msrb.mxu2 %v3978_v38  ;;  %v65_v31 = vld [vmem:[%s5402_s0 + $0x38] sm:$0xff]  ;;  %v3662_v38 = vor.u32 %v4787_v18, %v3659_v20 }
  0x44   :  { %v3961_v44 = vld [vmem:[#allocation2 + $0x640] sm:$0xf]  ;;  %v4865_v45 = vld [vmem:[#allocation2 + $0x64c] sm:$0xf0]  ;;  %v3834_v50 = vor.u32 %v4833_v43, %v3833_v41  ;;  %1730 = vmatpush.bf16.msrb.mxu3 %v4106_v42  ;;  %v73_v32 = vld [vmem:[%s5402_s0 + $0x78] sm:$0xff] }
  0x45   :  { %v4089_v46 = vld [vmem:[#allocation2 + $0x740] sm:$0xf]  ;;  %v4897_v47 = vld [vmem:[#allocation2 + $0x74c] sm:$0xf0]  ;;  %v3962_v51 = vor.u32 %v4865_v45, %v3961_v44  ;;  %1689 = vmatpush.bf16.msrb.mxu0 %v3706_v48  ;;  %v4687_v35 = vld [vmem:[#allocation2 + $0xc4] sm:$0xf]  ;;  %v5214_v44 = vpack.c.bf16 %v71_v30, %v63_v27 }
  0x46   :  { %v3689_v49 = vld [vmem:[#allocation2 + $0x420] sm:$0xf]  ;;  %v4797_v52 = vld [vmem:[#allocation2 + $0x42c] sm:$0xf0]  ;;  %v4090_v55 = vor.u32 %v4897_v47, %v4089_v46  ;;  %1703 = vmatpush.bf16.msrb.mxu1 %v3834_v50  ;;  %v3259_v36 = vld [vmem:[#allocation2 + $0xd0] sm:$0xf0]  ;;  %v5216_v47 = vpack.c.bf16 %v73_v32, %v65_v31 }
  0x47   :  { %v3817_v53 = vld [vmem:[#allocation2 + $0x520] sm:$0xf]  ;;  %v4829_v54 = vld [vmem:[#allocation2 + $0x52c] sm:$0xf0]  ;;  %v3690_v63 = vor.u32 %v4797_v52, %v3689_v49  ;;  %1717 = vmatpush.bf16.msrb.mxu2 %v3962_v51  ;;  %v4719_v37 = vld [vmem:[#allocation2 + $0x1c4] sm:$0xf]  ;;  %v3262_v48 = vor.u32 %v4687_v35, %v3259_v36 }
  0x48   :  { %v3945_v56 = vld [vmem:[#allocation2 + $0x620] sm:$0xf]  ;;  %v4861_v57 = vld [vmem:[#allocation2 + $0x62c] sm:$0xf0]  ;;  %v3818_v5 = vor.u32 %v4829_v54, %v3817_v53  ;;  %1731 = vmatpush.bf16.msrb.mxu3 %v4090_v55  ;;  %v3387_v40 = vld [vmem:[#allocation2 + $0x1d0] sm:$0xf0] }
  0x49   :  { %v4073_v59 = vld [vmem:[#allocation2 + $0x720] sm:$0xf]  ;;  %v4893_v60 = vld [vmem:[#allocation2 + $0x72c] sm:$0xf0]  ;;  %v3946_v6 = vor.u32 %v4861_v57, %v3945_v56  ;;  %1690 = vmatpush.bf16.msrb.mxu0 %v3690_v63  ;;  %v4751_v41 = vld [vmem:[#allocation2 + $0x2c4] sm:$0xf]  ;;  %v3390_v49 = vor.u32 %v4719_v37, %v3387_v40 }
  0x4a   :  { %v3673_v61 = vld [vmem:[#allocation2 + $0x400] sm:$0xf]  ;;  %v4793_v62 = vld [vmem:[#allocation2 + $0x40c] sm:$0xf0]  ;;  %v4074_v11 = vor.u32 %v4893_v60, %v4073_v59  ;;  %1704 = vmatpush.bf16.msrb.mxu1 %v3818_v5  ;;  %v3515_v42 = vld [vmem:[#allocation2 + $0x2d0] sm:$0xf0] }
  0x4b   :  { %v3801_v0 = vld [vmem:[#allocation2 + $0x500] sm:$0xf]  ;;  %v4825_v2 = vld [vmem:[#allocation2 + $0x50c] sm:$0xf0]  ;;  %v3674_v19 = vor.u32 %v4793_v62, %v3673_v61  ;;  %1718 = vmatpush.bf16.msrb.mxu2 %v3946_v6  ;;  %v4783_v45 = vld [vmem:[#allocation2 + $0x3c4] sm:$0xf]  ;;  %v3518_v50 = vor.u32 %v4751_v41, %v3515_v42 }
  0x4c   :  { %v3929_v3 = vld [vmem:[#allocation2 + $0x600] sm:$0xf]  ;;  %v4857_v4 = vld [vmem:[#allocation2 + $0x60c] sm:$0xf0]  ;;  %v3802_v23 = vor.u32 %v4825_v2, %v3801_v0  ;;  %1732 = vmatpush.bf16.msrb.mxu3 %v4074_v11  ;;  %v3643_v46 = vld [vmem:[#allocation2 + $0x3d0] sm:$0xf0] }
  0x4d   :  { %v4057_v7 = vld [vmem:[#allocation2 + $0x700] sm:$0xf]  ;;  %v4889_v8 = vld [vmem:[#allocation2 + $0x70c] sm:$0xf0]  ;;  %v3930_v24 = vor.u32 %v4857_v4, %v3929_v3  ;;  %1691 = vmatpush.bf16.msrb.mxu0 %v3674_v19  ;;  %v4683_v51 = vld [vmem:[#allocation2 + $0xa4] sm:$0xf]  ;;  %v3646_v54 = vor.u32 %v4783_v45, %v3643_v46 }
  0x4e   :  { %v62_v21 = vld [vmem:[%s5402_s0 + $0x20] sm:$0xff]  ;;  %v64_v25 = vld [vmem:[%s5402_s0 + $0x30] sm:$0xff]  ;;  %v4058_v28 = vor.u32 %v4889_v8, %v4057_v7  ;;  %1705 = vmatpush.bf16.msrb.mxu1 %v3802_v23 }
  0x4f   :  { %v70_v22 = vld [vmem:[%s5402_s0 + $0x60] sm:$0xff]  ;;  %v72_v26 = vld [vmem:[%s5402_s0 + $0x70] sm:$0xff]  ;;  %1719 = vmatpush.bf16.msrb.mxu2 %v3930_v24 }
  0x50   :  { %v5210_v39 = vpack.c.bf16 %v70_v22, %v62_v21  ;;  %v5212_v43 = vpack.c.bf16 %v72_v26, %v64_v25  ;;  %1733 = vmatpush.bf16.msrb.mxu3 %v4058_v28  ;;  %v3243_v52 = vld [vmem:[#allocation2 + $0xb0] sm:$0xf0]  ;;  %v4715_v53 = vld [vmem:[#allocation2 + $0x1a4] sm:$0xf] }
  0x51   :  { %1740 = vmatpush.bf16.msra.mxu0 %v3278_v29  ;;  %v3371_v55 = vld [vmem:[#allocation2 + $0x1b0] sm:$0xf0]  ;;  %v4747_v56 = vld [vmem:[#allocation2 + $0x2a4] sm:$0xf]  ;;  %1706 = vmatmul.bf16.vlgmr.msrb.gmra.mxu1 %v5214_v44  ;;  %v3246_v61 = vor.u32 %v4683_v51, %v3243_v52 }
  0x52   :  { %1754 = vmatpush.bf16.msra.mxu1 %v3406_v33  ;;  %1692 = vmatmul.bf16.vlgmr.msrb.gmra.mxu0 %v5210_v39  ;;  %v3499_v57 = vld [vmem:[#allocation2 + $0x2b0] sm:$0xf0]  ;;  %v4779_v59 = vld [vmem:[#allocation2 + $0x3a4] sm:$0xf]  ;;  %v3374_v62 = vor.u32 %v4715_v53, %v3371_v55 }
  0x53   :  { %1768 = vmatpush.bf16.msra.mxu2 %v3534_v34  ;;  %v3627_v60 = vld [vmem:[#allocation2 + $0x3b0] sm:$0xf0]  ;;  %1734 = vmatmul.bf16.vlgmr.msrb.gmra.mxu3 %v5216_v47  ;;  %v3502_v63 = vor.u32 %v4747_v56, %v3499_v57  ;;  %v4679_v0 = vld [vmem:[#allocation2 + $0x84] sm:$0xf] }
  0x54   :  { %1782 = vmatpush.bf16.msra.mxu3 %v3662_v38  ;;  %1720 = vmatmul.bf16.vlgmr.msrb.gmra.mxu2 %v5212_v43  ;;  %v3227_v2 = vld [vmem:[#allocation2 + $0x90] sm:$0xf0]  ;;  %v4711_v3 = vld [vmem:[#allocation2 + $0x184] sm:$0xf]  ;;  %v3630_v4 = vor.u32 %v4779_v59, %v3627_v60 }
  0x55   :  { %1741 = vmatpush.bf16.msra.mxu0 %v3262_v48  ;;  %v3355_v5 = vld [vmem:[#allocation2 + $0x190] sm:$0xf0]  ;;  %v4743_v6 = vld [vmem:[#allocation2 + $0x284] sm:$0xf]  ;;  %v3230_v11 = vor.u32 %v4679_v0, %v3227_v2 }
  0x56   :  { %1755 = vmatpush.bf16.msra.mxu1 %v3390_v49  ;;  %v3483_v7 = vld [vmem:[#allocation2 + $0x290] sm:$0xf0]  ;;  %v4775_v8 = vld [vmem:[#allocation2 + $0x384] sm:$0xf]  ;;  %v3358_v12 = vor.u32 %v4711_v3, %v3355_v5 }
  0x57   :  { %1769 = vmatpush.bf16.msra.mxu2 %v3518_v50  ;;  %v3611_v9 = vld [vmem:[#allocation2 + $0x390] sm:$0xf0]  ;;  %v3486_v13 = vor.u32 %v4743_v6, %v3483_v7  ;;  %v4675_v14 = vld [vmem:[#allocation2 + $0x64] sm:$0xf] }
  0x58   :  { %1783 = vmatpush.bf16.msra.mxu3 %v3646_v54  ;;  %v3211_v15 = vld [vmem:[#allocation2 + $0x70] sm:$0xf0]  ;;  %v4707_v16 = vld [vmem:[#allocation2 + $0x164] sm:$0xf]  ;;  %v3614_v18 = vor.u32 %v4775_v8, %v3611_v9 }
  0x59   :  { %1742 = vmatpush.bf16.msra.mxu0 %v3246_v61  ;;  %v3339_v19 = vld [vmem:[#allocation2 + $0x170] sm:$0xf0]  ;;  %v4739_v20 = vld [vmem:[#allocation2 + $0x264] sm:$0xf]  ;;  %v3214_v24 = vor.u32 %v4675_v14, %v3211_v15 }
  0x5a   :  { %1756 = vmatpush.bf16.msra.mxu1 %v3374_v62  ;;  %v3467_v21 = vld [vmem:[#allocation2 + $0x270] sm:$0xf0]  ;;  %v4771_v22 = vld [vmem:[#allocation2 + $0x364] sm:$0xf]  ;;  %v3342_v25 = vor.u32 %v4707_v16, %v3339_v19 }
  0x5b   :  { %1770 = vmatpush.bf16.msra.mxu2 %v3502_v63  ;;  %v3595_v23 = vld [vmem:[#allocation2 + $0x370] sm:$0xf0]  ;;  %v3470_v26 = vor.u32 %v4739_v20, %v3467_v21  ;;  %v4671_v27 = vld [vmem:[#allocation2 + $0x44] sm:$0xf] }
  0x5c   :  { %1784 = vmatpush.bf16.msra.mxu3 %v3630_v4  ;;  %v3195_v28 = vld [vmem:[#allocation2 + $0x50] sm:$0xf0]  ;;  %v4703_v29 = vld [vmem:[#allocation2 + $0x144] sm:$0xf]  ;;  %v3598_v30 = vor.u32 %v4771_v22, %v3595_v23 }
  0x5d   :  { %1743 = vmatpush.bf16.msra.mxu0 %v3230_v11  ;;  %v3323_v31 = vld [vmem:[#allocation2 + $0x150] sm:$0xf0]  ;;  %v4735_v32 = vld [vmem:[#allocation2 + $0x244] sm:$0xf]  ;;  %v3198_v36 = vor.u32 %v4671_v27, %v3195_v28 }
  0x5e   :  { %1757 = vmatpush.bf16.msra.mxu1 %v3358_v12  ;;  %v3451_v33 = vld [vmem:[#allocation2 + $0x250] sm:$0xf0]  ;;  %v4767_v34 = vld [vmem:[#allocation2 + $0x344] sm:$0xf]  ;;  %v3326_v37 = vor.u32 %v4703_v29, %v3323_v31 }
  0x5f   :  { %1771 = vmatpush.bf16.msra.mxu2 %v3486_v13  ;;  %v3579_v35 = vld [vmem:[#allocation2 + $0x350] sm:$0xf0]  ;;  %v3454_v38 = vor.u32 %v4735_v32, %v3451_v33  ;;  %v4667_v40 = vld [vmem:[#allocation2 + $0x24] sm:$0xf] }
  0x60   :  { %1785 = vmatpush.bf16.msra.mxu3 %v3614_v18  ;;  %v3179_v41 = vld [vmem:[#allocation2 + $0x30] sm:$0xf0]  ;;  %v4699_v42 = vld [vmem:[#allocation2 + $0x124] sm:$0xf]  ;;  %v3582_v45 = vor.u32 %v4767_v34, %v3579_v35 }
  0x61   :  { %1744 = vmatpush.bf16.msra.mxu0 %v3214_v24  ;;  %v3307_v46 = vld [vmem:[#allocation2 + $0x130] sm:$0xf0]  ;;  %v4731_v48 = vld [vmem:[#allocation2 + $0x224] sm:$0xf]  ;;  %v3182_v52 = vor.u32 %v4667_v40, %v3179_v41 }
  0x62   :  { %1758 = vmatpush.bf16.msra.mxu1 %v3342_v25  ;;  %v3435_v49 = vld [vmem:[#allocation2 + $0x230] sm:$0xf0]  ;;  %v4763_v50 = vld [vmem:[#allocation2 + $0x324] sm:$0xf]  ;;  %v3310_v55 = vor.u32 %v4699_v42, %v3307_v46 }
  0x63   :  { %1772 = vmatpush.bf16.msra.mxu2 %v3470_v26  ;;  %v3563_v51 = vld [vmem:[#allocation2 + $0x330] sm:$0xf0]  ;;  %v4663_v53 = vld [vmem:[#allocation2 + $0x4] sm:$0xf]  ;;  %v3438_v56 = vor.u32 %v4731_v48, %v3435_v49 }
  0x64   :  { %1786 = vmatpush.bf16.msra.mxu3 %v3598_v30  ;;  %v3163_v54 = vld [vmem:[#allocation2 + $0x10] sm:$0xf0]  ;;  %v4695_v57 = vld [vmem:[#allocation2 + $0x104] sm:$0xf]  ;;  %v3566_v61 = vor.u32 %v4763_v50, %v3563_v51 }
  0x65   :  { %1745 = vmatpush.bf16.msra.mxu0 %v3198_v36  ;;  %v3291_v59 = vld [vmem:[#allocation2 + $0x110] sm:$0xf0]  ;;  %v4727_v60 = vld [vmem:[#allocation2 + $0x204] sm:$0xf]  ;;  %v3166_v5 = vor.u32 %v4663_v53, %v3163_v54 }
  0x66   :  { %1759 = vmatpush.bf16.msra.mxu1 %v3326_v37  ;;  %v3419_v62 = vld [vmem:[#allocation2 + $0x210] sm:$0xf0]  ;;  %v4759_v63 = vld [vmem:[#allocation2 + $0x304] sm:$0xf]  ;;  %v3294_v9 = vor.u32 %v4695_v57, %v3291_v59 }
  0x67   :  { %1773 = vmatpush.bf16.msra.mxu2 %v3454_v38  ;;  %v3547_v0 = vld [vmem:[#allocation2 + $0x310] sm:$0xf0]  ;;  %v4819_v2 = vld [vmem:[#allocation2 + $0x4e4] sm:$0xf]  ;;  %v3422_v11 = vor.u32 %v4727_v60, %v3419_v62 }
  0x68   :  { %1787 = vmatpush.bf16.msra.mxu3 %v3582_v45  ;;  %v3787_v3 = vld [vmem:[#allocation2 + $0x4f0] sm:$0xf0]  ;;  %v4851_v4 = vld [vmem:[#allocation2 + $0x5e4] sm:$0xf]  ;;  %v3550_v14 = vor.u32 %v4759_v63, %v3547_v0 }
  0x69   :  { %1746 = vmatpush.bf16.msra.mxu0 %v3182_v52  ;;  %v3915_v6 = vld [vmem:[#allocation2 + $0x5f0] sm:$0xf0]  ;;  %v4883_v7 = vld [vmem:[#allocation2 + $0x6e4] sm:$0xf]  ;;  %v3790_v15 = vor.u32 %v4819_v2, %v3787_v3 }
  0x6a   :  { %v4043_v8 = vld [vmem:[#allocation2 + $0x6f0] sm:$0xf0]  ;;  %1760 = vmatpush.bf16.msra.mxu1 %v3310_v55  ;;  %v4915_v12 = vld [vmem:[#allocation2 + $0x7e4] sm:$0xf]  ;;  %v3918_v16 = vor.u32 %v4851_v4, %v3915_v6 }
  0x6b   :  { %1774 = vmatpush.bf16.msra.mxu2 %v3438_v56  ;;  %v4171_v13 = vld [vmem:[#allocation2 + $0x7f0] sm:$0xf0]  ;;  %v4046_v18 = vor.u32 %v4883_v7, %v4043_v8  ;;  %v4815_v19 = vld [vmem:[#allocation2 + $0x4c4] sm:$0xf] }
  0x6c   :  { %1788 = vmatpush.bf16.msra.mxu3 %v3566_v61  ;;  %v3771_v20 = vld [vmem:[#allocation2 + $0x4d0] sm:$0xf0]  ;;  %v4847_v21 = vld [vmem:[#allocation2 + $0x5c4] sm:$0xf]  ;;  %v4174_v22 = vor.u32 %v4915_v12, %v4171_v13 }
  0x6d   :  { %1747 = vmatpush.bf16.msra.mxu0 %v3166_v5  ;;  %v3899_v23 = vld [vmem:[#allocation2 + $0x5d0] sm:$0xf0]  ;;  %v4879_v24 = vld [vmem:[#allocation2 + $0x6c4] sm:$0xf]  ;;  %v3774_v28 = vor.u32 %v4815_v19, %v3771_v20 }
  0x6e   :  { %v4027_v25 = vld [vmem:[#allocation2 + $0x6d0] sm:$0xf0]  ;;  %1761 = vmatpush.bf16.msra.mxu1 %v3294_v9  ;;  %v4911_v26 = vld [vmem:[#allocation2 + $0x7c4] sm:$0xf]  ;;  %v3902_v29 = vor.u32 %v4847_v21, %v3899_v23 }
  0x6f   :  { %1775 = vmatpush.bf16.msra.mxu2 %v3422_v11  ;;  %v4155_v27 = vld [vmem:[#allocation2 + $0x7d0] sm:$0xf0]  ;;  %v4030_v30 = vor.u32 %v4879_v24, %v4027_v25  ;;  %v4811_v31 = vld [vmem:[#allocation2 + $0x4a4] sm:$0xf] }
  0x70   :  { %1789 = vmatpush.bf16.msra.mxu3 %v3550_v14  ;;  %v3755_v32 = vld [vmem:[#allocation2 + $0x4b0] sm:$0xf0]  ;;  %v4843_v33 = vld [vmem:[#allocation2 + $0x5a4] sm:$0xf]  ;;  %v4158_v34 = vor.u32 %v4911_v26, %v4155_v27  ;;  %1748 = vmatmul.bf16.vlgmr.msra.gmra.mxu0 %v5159_v58 }
  0x71   :  { %1796 = vmatpush.bf16.msrb.mxu0 %v3790_v15  ;;  %v3883_v35 = vld [vmem:[#allocation2 + $0x5b0] sm:$0xf0]  ;;  %v4875_v36 = vld [vmem:[#allocation2 + $0x6a4] sm:$0xf]  ;;  %1762 = vmatmul.bf16.vlgmr.msra.gmra.mxu1 %v5177_v10  ;;  %v3758_v41 = vor.u32 %v4811_v31, %v3755_v32 }
  0x72   :  { %1810 = vmatpush.bf16.msrb.mxu1 %v3918_v16  ;;  %v4011_v37 = vld [vmem:[#allocation2 + $0x6b0] sm:$0xf0]  ;;  %v4907_v38 = vld [vmem:[#allocation2 + $0x7a4] sm:$0xf]  ;;  %1776 = vmatmul.bf16.vlgmr.msra.gmra.mxu2 %v5164_v1  ;;  %v3886_v42 = vor.u32 %v4843_v33, %v3883_v35 }
  0x73   :  { %1824 = vmatpush.bf16.msrb.mxu2 %v4046_v18  ;;  %v4139_v40 = vld [vmem:[#allocation2 + $0x7b0] sm:$0xf0]  ;;  %1790 = vmatmul.bf16.vlgmr.msra.gmra.mxu3 %v5182_v17  ;;  %v4014_v45 = vor.u32 %v4875_v36, %v4011_v37  ;;  %v4807_v46 = vld [vmem:[#allocation2 + $0x484] sm:$0xf] }
  0x74   :  { %1838 = vmatpush.bf16.msrb.mxu3 %v4174_v22  ;;  %v3739_v48 = vld [vmem:[#allocation2 + $0x490] sm:$0xf0]  ;;  %v4839_v49 = vld [vmem:[#allocation2 + $0x584] sm:$0xf]  ;;  %v4142_v50 = vor.u32 %v4907_v38, %v4139_v40 }
  0x75   :  { %1797 = vmatpush.bf16.msrb.mxu0 %v3774_v28  ;;  %v3867_v51 = vld [vmem:[#allocation2 + $0x590] sm:$0xf0]  ;;  %v4871_v52 = vld [vmem:[#allocation2 + $0x684] sm:$0xf]  ;;  %v3742_v56 = vor.u32 %v4807_v46, %v3739_v48  ;;  %v3281_v48 = vld [vmem:[#allocation2 + $0xe8] sm:$0xf] }
  0x76   :  { %1811 = vmatpush.bf16.msrb.mxu1 %v3902_v29  ;;  %v3995_v53 = vld [vmem:[#allocation2 + $0x690] sm:$0xf0]  ;;  %v4903_v54 = vld [vmem:[#allocation2 + $0x784] sm:$0xf]  ;;  %v3870_v57 = vor.u32 %v4839_v49, %v3867_v51  ;;  %v4694_v49 = vld [vmem:[#allocation2 + $0xf4] sm:$0xf0] }
  0x77   :  { %1825 = vmatpush.bf16.msrb.mxu2 %v4030_v30  ;;  %v4123_v55 = vld [vmem:[#allocation2 + $0x790] sm:$0xf0]  ;;  %v3998_v59 = vor.u32 %v4871_v52, %v3995_v53  ;;  %v4803_v60 = vld [vmem:[#allocation2 + $0x464] sm:$0xf]  ;;  %v4726_v52 = vld [vmem:[#allocation2 + $0x1f4] sm:$0xf0] }
  0x78   :  { %1839 = vmatpush.bf16.msrb.mxu3 %v4158_v34  ;;  %v3723_v61 = vld [vmem:[#allocation2 + $0x470] sm:$0xf0]  ;;  %v4835_v62 = vld [vmem:[#allocation2 + $0x564] sm:$0xf]  ;;  %v4126_v63 = vor.u32 %v4903_v54, %v4123_v55  ;;  %v3537_v53 = vld [vmem:[#allocation2 + $0x2e8] sm:$0xf] }
  0x79   :  { %1798 = vmatpush.bf16.msrb.mxu0 %v3758_v41  ;;  %v3851_v0 = vld [vmem:[#allocation2 + $0x570] sm:$0xf0]  ;;  %v4867_v2 = vld [vmem:[#allocation2 + $0x664] sm:$0xf]  ;;  %v3726_v6 = vor.u32 %v4803_v60, %v3723_v61  ;;  %v4758_v54 = vld [vmem:[#allocation2 + $0x2f4] sm:$0xf0]  ;;  %v3282_v61 = vor.u32 %v4694_v49, %v3281_v48 }
  0x7a   :  { %1812 = vmatpush.bf16.msrb.mxu1 %v3886_v42  ;;  %v3979_v3 = vld [vmem:[#allocation2 + $0x670] sm:$0xf0]  ;;  %v4899_v4 = vld [vmem:[#allocation2 + $0x764] sm:$0xf]  ;;  %v3854_v7 = vor.u32 %v4835_v62, %v3851_v0  ;;  %v3265_v0 = vld [vmem:[#allocation2 + $0xc8] sm:$0xf] }
  0x7b   :  { %1826 = vmatpush.bf16.msrb.mxu2 %v4014_v45  ;;  %v4107_v5 = vld [vmem:[#allocation2 + $0x770] sm:$0xf0]  ;;  %v3982_v8 = vor.u32 %v4867_v2, %v3979_v3  ;;  %v4799_v9 = vld [vmem:[#allocation2 + $0x444] sm:$0xf]  ;;  %v4690_v2 = vld [vmem:[#allocation2 + $0xd4] sm:$0xf0] }
  0x7c   :  { %1840 = vmatpush.bf16.msrb.mxu3 %v4142_v50  ;;  %v3707_v11 = vld [vmem:[#allocation2 + $0x450] sm:$0xf0]  ;;  %v4831_v12 = vld [vmem:[#allocation2 + $0x544] sm:$0xf]  ;;  %v4110_v13 = vor.u32 %v4899_v4, %v4107_v5  ;;  %v3409_v50 = vld [vmem:[#allocation2 + $0x1e8] sm:$0xf] }
  0x7d   :  { %1799 = vmatpush.bf16.msrb.mxu0 %v3742_v56  ;;  %v3835_v14 = vld [vmem:[#allocation2 + $0x550] sm:$0xf0]  ;;  %v4863_v15 = vld [vmem:[#allocation2 + $0x644] sm:$0xf]  ;;  %v3710_v20 = vor.u32 %v4799_v9, %v3707_v11  ;;  %v3410_v62 = vor.u32 %v4726_v52, %v3409_v50  ;;  %v3393_v3 = vld [vmem:[#allocation2 + $0x1c8] sm:$0xf]  ;;  %v3266_v11 = vor.u32 %v4690_v2, %v3265_v0 }
  0x7e   :  { %1813 = vmatpush.bf16.msrb.mxu1 %v3870_v57  ;;  %v3963_v16 = vld [vmem:[#allocation2 + $0x650] sm:$0xf0]  ;;  %v4895_v18 = vld [vmem:[#allocation2 + $0x744] sm:$0xf]  ;;  %v3838_v21 = vor.u32 %v4831_v12, %v3835_v14  ;;  %v3665_v57 = vld [vmem:[#allocation2 + $0x3e8] sm:$0xf] }
  0x7f   :  { %1827 = vmatpush.bf16.msrb.mxu2 %v3998_v59  ;;  %v4091_v19 = vld [vmem:[#allocation2 + $0x750] sm:$0xf0]  ;;  %v3966_v22 = vor.u32 %v4863_v15, %v3963_v16  ;;  %v4795_v23 = vld [vmem:[#allocation2 + $0x424] sm:$0xf]  ;;  %v4790_v59 = vld [vmem:[#allocation2 + $0x3f4] sm:$0xf0] }
  0x80   :  { %1841 = vmatpush.bf16.msrb.mxu3 %v4126_v63  ;;  %v3691_v24 = vld [vmem:[#allocation2 + $0x430] sm:$0xf0]  ;;  %v4827_v25 = vld [vmem:[#allocation2 + $0x524] sm:$0xf]  ;;  %v4094_v26 = vor.u32 %v4895_v18, %v4091_v19  ;;  %v3538_v63 = vor.u32 %v4758_v54, %v3537_v53  ;;  %v3666_v4 = vor.u32 %v4790_v59, %v3665_v57  ;;  %v4722_v5 = vld [vmem:[#allocation2 + $0x1d4] sm:$0xf0] }
  0x81   :  { %1800 = vmatpush.bf16.msrb.mxu0 %v3726_v6  ;;  %v3819_v27 = vld [vmem:[#allocation2 + $0x530] sm:$0xf0]  ;;  %v4859_v28 = vld [vmem:[#allocation2 + $0x624] sm:$0xf]  ;;  %v3694_v32 = vor.u32 %v4795_v23, %v3691_v24  ;;  %v3521_v6 = vld [vmem:[#allocation2 + $0x2c8] sm:$0xf]  ;;  %v3394_v12 = vor.u32 %v4722_v5, %v3393_v3 }
  0x82   :  { %1814 = vmatpush.bf16.msrb.mxu1 %v3854_v7  ;;  %v3947_v29 = vld [vmem:[#allocation2 + $0x630] sm:$0xf0]  ;;  %v4891_v30 = vld [vmem:[#allocation2 + $0x724] sm:$0xf]  ;;  %v3822_v35 = vor.u32 %v4827_v25, %v3819_v27  ;;  %v4754_v7 = vld [vmem:[#allocation2 + $0x2d4] sm:$0xf0] }
  0x83   :  { %1828 = vmatpush.bf16.msrb.mxu2 %v3982_v8  ;;  %v4075_v31 = vld [vmem:[#allocation2 + $0x730] sm:$0xf0]  ;;  %v4791_v33 = vld [vmem:[#allocation2 + $0x404] sm:$0xf]  ;;  %v3950_v36 = vor.u32 %v4859_v28, %v3947_v29  ;;  %v3649_v8 = vld [vmem:[#allocation2 + $0x3c8] sm:$0xf] }
  0x84   :  { %1842 = vmatpush.bf16.msrb.mxu3 %v4110_v13  ;;  %v3675_v34 = vld [vmem:[#allocation2 + $0x410] sm:$0xf0]  ;;  %v4823_v37 = vld [vmem:[#allocation2 + $0x504] sm:$0xf]  ;;  %v4078_v41 = vor.u32 %v4891_v30, %v4075_v31  ;;  %v4786_v9 = vld [vmem:[#allocation2 + $0x3d4] sm:$0xf0]  ;;  %v3522_v13 = vor.u32 %v4754_v7, %v3521_v6 }
  0x85   :  { %1801 = vmatpush.bf16.msrb.mxu0 %v3710_v20  ;;  %v3803_v38 = vld [vmem:[#allocation2 + $0x510] sm:$0xf0]  ;;  %v4855_v40 = vld [vmem:[#allocation2 + $0x604] sm:$0xf]  ;;  %v3678_v51 = vor.u32 %v4791_v33, %v3675_v34  ;;  %v3249_v14 = vld [vmem:[#allocation2 + $0xa8] sm:$0xf]  ;;  %v3650_v18 = vor.u32 %v4786_v9, %v3649_v8 }
  0x86   :  { %1815 = vmatpush.bf16.msrb.mxu1 %v3838_v21  ;;  %v3931_v42 = vld [vmem:[#allocation2 + $0x610] sm:$0xf0]  ;;  %v4887_v45 = vld [vmem:[#allocation2 + $0x704] sm:$0xf]  ;;  %v3806_v55 = vor.u32 %v4823_v37, %v3803_v38  ;;  %v4686_v15 = vld [vmem:[#allocation2 + $0xb4] sm:$0xf0] }
  0x87   :  { %1829 = vmatpush.bf16.msrb.mxu2 %v3966_v22  ;;  %v4059_v46 = vld [vmem:[#allocation2 + $0x710] sm:$0xf0]  ;;  %v3934_v56 = vor.u32 %v4855_v40, %v3931_v42  ;;  %v3377_v16 = vld [vmem:[#allocation2 + $0x1a8] sm:$0xf]  ;;  %v4718_v19 = vld [vmem:[#allocation2 + $0x1b4] sm:$0xf0]  ;;  %v3250_v24 = vor.u32 %v4686_v15, %v3249_v14 }
  0x88   :  { %1843 = vmatpush.bf16.msrb.mxu3 %v4094_v26  ;;  %v4062_v60 = vor.u32 %v4887_v45, %v4059_v46  ;;  %v3505_v20 = vld [vmem:[#allocation2 + $0x2a8] sm:$0xf]  ;;  %v4750_v21 = vld [vmem:[#allocation2 + $0x2b4] sm:$0xf0]  ;;  %v3378_v25 = vor.u32 %v4718_v19, %v3377_v16 }
  0x89   :  { %1802 = vmatpush.bf16.msrb.mxu0 %v3694_v32  ;;  %v3633_v22 = vld [vmem:[#allocation2 + $0x3a8] sm:$0xf]  ;;  %v4782_v23 = vld [vmem:[#allocation2 + $0x3b4] sm:$0xf0]  ;;  %v3506_v26 = vor.u32 %v4750_v21, %v3505_v20 }
  0x8a   :  { %1816 = vmatpush.bf16.msrb.mxu1 %v3822_v35  ;;  %v3233_v27 = vld [vmem:[#allocation2 + $0x88] sm:$0xf]  ;;  %v4682_v28 = vld [vmem:[#allocation2 + $0x94] sm:$0xf0]  ;;  %v3634_v30 = vor.u32 %v4782_v23, %v3633_v22 }
  0x8b   :  { %1830 = vmatpush.bf16.msrb.mxu2 %v3950_v36  ;;  %v3361_v29 = vld [vmem:[#allocation2 + $0x188] sm:$0xf]  ;;  %v4714_v31 = vld [vmem:[#allocation2 + $0x194] sm:$0xf0]  ;;  %v3234_v36 = vor.u32 %v4682_v28, %v3233_v27 }
  0x8c   :  { %1844 = vmatpush.bf16.msrb.mxu3 %v4078_v41  ;;  %v3489_v32 = vld [vmem:[#allocation2 + $0x288] sm:$0xf]  ;;  %v4746_v33 = vld [vmem:[#allocation2 + $0x294] sm:$0xf0]  ;;  %v3362_v37 = vor.u32 %v4714_v31, %v3361_v29 }
  0x8d   :  { %1803 = vmatpush.bf16.msrb.mxu0 %v3678_v51  ;;  %v3617_v34 = vld [vmem:[#allocation2 + $0x388] sm:$0xf]  ;;  %v4778_v35 = vld [vmem:[#allocation2 + $0x394] sm:$0xf0]  ;;  %v3490_v38 = vor.u32 %v4746_v33, %v3489_v32 }
  0x8e   :  { %1817 = vmatpush.bf16.msrb.mxu1 %v3806_v55  ;;  %v3217_v40 = vld [vmem:[#allocation2 + $0x68] sm:$0xf]  ;;  %v4678_v41 = vld [vmem:[#allocation2 + $0x74] sm:$0xf0]  ;;  %v3618_v45 = vor.u32 %v4778_v35, %v3617_v34 }
  0x8f   :  { %1831 = vmatpush.bf16.msrb.mxu2 %v3934_v56  ;;  %v3345_v42 = vld [vmem:[#allocation2 + $0x168] sm:$0xf]  ;;  %v4710_v46 = vld [vmem:[#allocation2 + $0x174] sm:$0xf0]  ;;  %v3218_v52 = vor.u32 %v4678_v41, %v3217_v40 }
  0x90   :  { %1845 = vmatpush.bf16.msrb.mxu3 %v4062_v60  ;;  %1804 = vmatmul.bf16.vlgmr.msrb.gmra.mxu0 %v5210_v39  ;;  %v3473_v48 = vld [vmem:[#allocation2 + $0x268] sm:$0xf]  ;;  %v4742_v49 = vld [vmem:[#allocation2 + $0x274] sm:$0xf0]  ;;  %v3346_v53 = vor.u32 %v4710_v46, %v3345_v42 }
  0x91   :  { %1852 = vmatpush.bf16.msra.mxu0 %v3282_v61  ;;  %1818 = vmatmul.bf16.vlgmr.msrb.gmra.mxu1 %v5214_v44  ;;  %v3601_v50 = vld [vmem:[#allocation2 + $0x368] sm:$0xf]  ;;  %v4774_v51 = vld [vmem:[#allocation2 + $0x374] sm:$0xf0]  ;;  %v3474_v54 = vor.u32 %v4742_v49, %v3473_v48 }
  0x92   :  { %1866 = vmatpush.bf16.msra.mxu1 %v3410_v62  ;;  %1832 = vmatmul.bf16.vlgmr.msrb.gmra.mxu2 %v5212_v43  ;;  %v3201_v55 = vld [vmem:[#allocation2 + $0x48] sm:$0xf]  ;;  %v4674_v56 = vld [vmem:[#allocation2 + $0x54] sm:$0xf0]  ;;  %v3602_v59 = vor.u32 %v4774_v51, %v3601_v50 }
  0x93   :  { %1880 = vmatpush.bf16.msra.mxu2 %v3538_v63  ;;  %1846 = vmatmul.bf16.vlgmr.msrb.gmra.mxu3 %v5216_v47  ;;  %v3329_v57 = vld [vmem:[#allocation2 + $0x148] sm:$0xf]  ;;  %v4706_v60 = vld [vmem:[#allocation2 + $0x154] sm:$0xf0]  ;;  %v3202_v2 = vor.u32 %v4674_v56, %v3201_v55 }
  0x94   :  { %1894 = vmatpush.bf16.msra.mxu3 %v3666_v4  ;;  %v3457_v61 = vld [vmem:[#allocation2 + $0x248] sm:$0xf]  ;;  %v4738_v62 = vld [vmem:[#allocation2 + $0x254] sm:$0xf0]  ;;  %v3330_v3 = vor.u32 %v4706_v60, %v3329_v57 }
  0x95   :  { %1853 = vmatpush.bf16.msra.mxu0 %v3266_v11  ;;  %v3585_v63 = vld [vmem:[#allocation2 + $0x348] sm:$0xf]  ;;  %v4770_v0 = vld [vmem:[#allocation2 + $0x354] sm:$0xf0]  ;;  %v3458_v4 = vor.u32 %v4738_v62, %v3457_v61 }
  0x96   :  { %1867 = vmatpush.bf16.msra.mxu1 %v3394_v12  ;;  %v3185_v5 = vld [vmem:[#allocation2 + $0x28] sm:$0xf]  ;;  %v4670_v6 = vld [vmem:[#allocation2 + $0x34] sm:$0xf0]  ;;  %v3586_v8 = vor.u32 %v4770_v0, %v3585_v63 }
  0x97   :  { %1881 = vmatpush.bf16.msra.mxu2 %v3522_v13  ;;  %v3313_v7 = vld [vmem:[#allocation2 + $0x128] sm:$0xf]  ;;  %v4702_v9 = vld [vmem:[#allocation2 + $0x134] sm:$0xf0]  ;;  %v3186_v15 = vor.u32 %v4670_v6, %v3185_v5 }
  0x98   :  { %1895 = vmatpush.bf16.msra.mxu3 %v3650_v18  ;;  %v3441_v11 = vld [vmem:[#allocation2 + $0x228] sm:$0xf]  ;;  %v4734_v12 = vld [vmem:[#allocation2 + $0x234] sm:$0xf0]  ;;  %v3314_v19 = vor.u32 %v4702_v9, %v3313_v7 }
  0x99   :  { %1854 = vmatpush.bf16.msra.mxu0 %v3250_v24  ;;  %v3569_v13 = vld [vmem:[#allocation2 + $0x328] sm:$0xf]  ;;  %v4766_v14 = vld [vmem:[#allocation2 + $0x334] sm:$0xf0]  ;;  %v3442_v20 = vor.u32 %v4734_v12, %v3441_v11 }
  0x9a   :  { %1868 = vmatpush.bf16.msra.mxu1 %v3378_v25  ;;  %v3169_v16 = vld [vmem:[#allocation2 + $0x8] sm:$0xf]  ;;  %v4666_v18 = vld [vmem:[#allocation2 + $0x14] sm:$0xf0]  ;;  %v3570_v24 = vor.u32 %v4766_v14, %v3569_v13 }
  0x9b   :  { %1882 = vmatpush.bf16.msra.mxu2 %v3506_v26  ;;  %v3297_v21 = vld [vmem:[#allocation2 + $0x108] sm:$0xf]  ;;  %v4698_v22 = vld [vmem:[#allocation2 + $0x114] sm:$0xf0]  ;;  %v3170_v31 = vor.u32 %v4666_v18, %v3169_v16 }
  0x9c   :  { %1896 = vmatpush.bf16.msra.mxu3 %v3634_v30  ;;  %v3425_v23 = vld [vmem:[#allocation2 + $0x208] sm:$0xf]  ;;  %v4730_v25 = vld [vmem:[#allocation2 + $0x214] sm:$0xf0]  ;;  %v3298_v35 = vor.u32 %v4698_v22, %v3297_v21 }
  0x9d   :  { %1855 = vmatpush.bf16.msra.mxu0 %v3234_v36  ;;  %v3553_v26 = vld [vmem:[#allocation2 + $0x308] sm:$0xf]  ;;  %v4762_v27 = vld [vmem:[#allocation2 + $0x314] sm:$0xf0]  ;;  %v3426_v36 = vor.u32 %v4730_v25, %v3425_v23 }
  0x9e   :  { %1869 = vmatpush.bf16.msra.mxu1 %v3362_v37  ;;  %v3793_v28 = vld [vmem:[#allocation2 + $0x4e8] sm:$0xf]  ;;  %v4822_v29 = vld [vmem:[#allocation2 + $0x4f4] sm:$0xf0]  ;;  %v3554_v40 = vor.u32 %v4762_v27, %v3553_v26 }
  0x9f   :  { %1883 = vmatpush.bf16.msra.mxu2 %v3490_v38  ;;  %v3921_v30 = vld [vmem:[#allocation2 + $0x5e8] sm:$0xf]  ;;  %v4854_v32 = vld [vmem:[#allocation2 + $0x5f4] sm:$0xf0]  ;;  %v3794_v41 = vor.u32 %v4822_v29, %v3793_v28 }
  0xa0   :  { %1897 = vmatpush.bf16.msra.mxu3 %v3618_v45  ;;  %v4049_v33 = vld [vmem:[#allocation2 + $0x6e8] sm:$0xf]  ;;  %v4886_v34 = vld [vmem:[#allocation2 + $0x6f4] sm:$0xf0]  ;;  %v3922_v42 = vor.u32 %v4854_v32, %v3921_v30 }
  0xa1   :  { %1856 = vmatpush.bf16.msra.mxu0 %v3218_v52  ;;  %v4177_v37 = vld [vmem:[#allocation2 + $0x7e8] sm:$0xf]  ;;  %v4918_v38 = vld [vmem:[#allocation2 + $0x7f4] sm:$0xf0]  ;;  %v4050_v45 = vor.u32 %v4886_v34, %v4049_v33 }
  0xa2   :  { %1870 = vmatpush.bf16.msra.mxu1 %v3346_v53  ;;  %v3777_v46 = vld [vmem:[#allocation2 + $0x4c8] sm:$0xf]  ;;  %v4818_v48 = vld [vmem:[#allocation2 + $0x4d4] sm:$0xf0]  ;;  %v4178_v50 = vor.u32 %v4918_v38, %v4177_v37 }
  0xa3   :  { %1884 = vmatpush.bf16.msra.mxu2 %v3474_v54  ;;  %v3905_v49 = vld [vmem:[#allocation2 + $0x5c8] sm:$0xf]  ;;  %v4850_v51 = vld [vmem:[#allocation2 + $0x5d4] sm:$0xf0]  ;;  %v3778_v56 = vor.u32 %v4818_v48, %v3777_v46 }
  0xa4   :  { %1898 = vmatpush.bf16.msra.mxu3 %v3602_v59  ;;  %v4033_v52 = vld [vmem:[#allocation2 + $0x6c8] sm:$0xf]  ;;  %v4882_v53 = vld [vmem:[#allocation2 + $0x6d4] sm:$0xf0]  ;;  %v3906_v57 = vor.u32 %v4850_v51, %v3905_v49 }
  0xa5   :  { %1857 = vmatpush.bf16.msra.mxu0 %v3202_v2  ;;  %v4161_v54 = vld [vmem:[#allocation2 + $0x7c8] sm:$0xf]  ;;  %v4914_v55 = vld [vmem:[#allocation2 + $0x7d4] sm:$0xf0]  ;;  %v4034_v59 = vor.u32 %v4882_v53, %v4033_v52 }
  0xa6   :  { %1871 = vmatpush.bf16.msra.mxu1 %v3330_v3  ;;  %v3761_v60 = vld [vmem:[#allocation2 + $0x4a8] sm:$0xf]  ;;  %v4814_v61 = vld [vmem:[#allocation2 + $0x4b4] sm:$0xf0]  ;;  %v4162_v63 = vor.u32 %v4914_v55, %v4161_v54 }
  0xa7   :  { %1885 = vmatpush.bf16.msra.mxu2 %v3458_v4  ;;  %v3889_v62 = vld [vmem:[#allocation2 + $0x5a8] sm:$0xf]  ;;  %v4846_v0 = vld [vmem:[#allocation2 + $0x5b4] sm:$0xf0]  ;;  %v3762_v6 = vor.u32 %v4814_v61, %v3761_v60 }
  0xa8   :  { %1899 = vmatpush.bf16.msra.mxu3 %v3586_v8  ;;  %v4017_v2 = vld [vmem:[#allocation2 + $0x6a8] sm:$0xf]  ;;  %v4878_v3 = vld [vmem:[#allocation2 + $0x6b4] sm:$0xf0]  ;;  %v3890_v7 = vor.u32 %v4846_v0, %v3889_v62 }
  0xa9   :  { %1858 = vmatpush.bf16.msra.mxu0 %v3186_v15  ;;  %v4145_v4 = vld [vmem:[#allocation2 + $0x7a8] sm:$0xf]  ;;  %v4910_v5 = vld [vmem:[#allocation2 + $0x7b4] sm:$0xf0]  ;;  %v4018_v8 = vor.u32 %v4878_v3, %v4017_v2 }
  0xaa   :  { %1872 = vmatpush.bf16.msra.mxu1 %v3314_v19  ;;  %v3745_v9 = vld [vmem:[#allocation2 + $0x488] sm:$0xf]  ;;  %v4810_v11 = vld [vmem:[#allocation2 + $0x494] sm:$0xf0]  ;;  %v4146_v13 = vor.u32 %v4910_v5, %v4145_v4 }
  0xab   :  { %1886 = vmatpush.bf16.msra.mxu2 %v3442_v20  ;;  %v3873_v12 = vld [vmem:[#allocation2 + $0x588] sm:$0xf]  ;;  %v4842_v14 = vld [vmem:[#allocation2 + $0x594] sm:$0xf0]  ;;  %v3746_v20 = vor.u32 %v4810_v11, %v3745_v9  ;;  %v4692_v11 = vld [vmem:[#allocation2 + $0xec] sm:$0xf] }
  0xac   :  { %1900 = vmatpush.bf16.msra.mxu3 %v3570_v24  ;;  %v4001_v15 = vld [vmem:[#allocation2 + $0x688] sm:$0xf]  ;;  %v4874_v16 = vld [vmem:[#allocation2 + $0x694] sm:$0xf0]  ;;  %v3874_v21 = vor.u32 %v4842_v14, %v3873_v12  ;;  %v3283_v12 = vld [vmem:[#allocation2 + $0xf8] sm:$0xf0] }
  0xad   :  { %1859 = vmatpush.bf16.msra.mxu0 %v3170_v31  ;;  %v4129_v18 = vld [vmem:[#allocation2 + $0x788] sm:$0xf]  ;;  %v4906_v19 = vld [vmem:[#allocation2 + $0x794] sm:$0xf0]  ;;  %v4002_v22 = vor.u32 %v4874_v16, %v4001_v15  ;;  %v3411_v15 = vld [vmem:[#allocation2 + $0x1f8] sm:$0xf0] }
  0xae   :  { %1873 = vmatpush.bf16.msra.mxu1 %v3298_v35  ;;  %v3729_v23 = vld [vmem:[#allocation2 + $0x468] sm:$0xf]  ;;  %v4806_v24 = vld [vmem:[#allocation2 + $0x474] sm:$0xf0]  ;;  %v4130_v26 = vor.u32 %v4906_v19, %v4129_v18  ;;  %v4756_v16 = vld [vmem:[#allocation2 + $0x2ec] sm:$0xf] }
  0xaf   :  { %1887 = vmatpush.bf16.msra.mxu2 %v3426_v36  ;;  %v3857_v25 = vld [vmem:[#allocation2 + $0x568] sm:$0xf]  ;;  %v4838_v27 = vld [vmem:[#allocation2 + $0x574] sm:$0xf0]  ;;  %v3730_v32 = vor.u32 %v4806_v24, %v3729_v23  ;;  %v3539_v18 = vld [vmem:[#allocation2 + $0x2f8] sm:$0xf0]  ;;  %v3286_v24 = vor.u32 %v4692_v11, %v3283_v12 }
  0xb0   :  { %1901 = vmatpush.bf16.msra.mxu3 %v3554_v40  ;;  %1860 = vmatmul.bf16.vlgmr.msra.gmra.mxu0 %v5159_v58  ;;  %v3985_v28 = vld [vmem:[#allocation2 + $0x668] sm:$0xf]  ;;  %v4870_v29 = vld [vmem:[#allocation2 + $0x674] sm:$0xf0]  ;;  %v3858_v33 = vor.u32 %v4838_v27, %v3857_v25  ;;  %v4688_v27 = vld [vmem:[#allocation2 + $0xcc] sm:$0xf] }
  0xb1   :  { %1908 = vmatpush.bf16.msrb.mxu0 %v3794_v41  ;;  %1874 = vmatmul.bf16.vlgmr.msra.gmra.mxu1 %v5177_v10  ;;  %v4113_v30 = vld [vmem:[#allocation2 + $0x768] sm:$0xf]  ;;  %v4902_v31 = vld [vmem:[#allocation2 + $0x774] sm:$0xf0]  ;;  %v3986_v34 = vor.u32 %v4870_v29, %v3985_v28  ;;  %v3267_v28 = vld [vmem:[#allocation2 + $0xd8] sm:$0xf0] }
  0xb2   :  { %1922 = vmatpush.bf16.msrb.mxu1 %v3922_v42  ;;  %1888 = vmatmul.bf16.vlgmr.msra.gmra.mxu2 %v5164_v1  ;;  %v3713_v35 = vld [vmem:[#allocation2 + $0x448] sm:$0xf]  ;;  %v4802_v36 = vld [vmem:[#allocation2 + $0x454] sm:$0xf0]  ;;  %v4114_v38 = vor.u32 %v4902_v31, %v4113_v30  ;;  %v4720_v29 = vld [vmem:[#allocation2 + $0x1cc] sm:$0xf] }
  0xb3   :  { %1936 = vmatpush.bf16.msrb.mxu2 %v4050_v45  ;;  %1902 = vmatmul.bf16.vlgmr.msra.gmra.mxu3 %v5182_v17  ;;  %v3841_v37 = vld [vmem:[#allocation2 + $0x548] sm:$0xf]  ;;  %v4834_v40 = vld [vmem:[#allocation2 + $0x554] sm:$0xf0]  ;;  %v3714_v48 = vor.u32 %v4802_v36, %v3713_v35  ;;  %v3395_v31 = vld [vmem:[#allocation2 + $0x1d8] sm:$0xf0]  ;;  %v3270_v36 = vor.u32 %v4688_v27, %v3267_v28 }
  0xb4   :  { %1950 = vmatpush.bf16.msrb.mxu3 %v4178_v50  ;;  %v3969_v41 = vld [vmem:[#allocation2 + $0x648] sm:$0xf]  ;;  %v4866_v42 = vld [vmem:[#allocation2 + $0x654] sm:$0xf0]  ;;  %v3842_v49 = vor.u32 %v4834_v40, %v3841_v37  ;;  %v3651_v35 = vld [vmem:[#allocation2 + $0x3d8] sm:$0xf0]  ;;  %v3398_v37 = vor.u32 %v4720_v29, %v3395_v31 }
  0xb5   :  { %1909 = vmatpush.bf16.msrb.mxu0 %v3778_v56  ;;  %v4097_v45 = vld [vmem:[#allocation2 + $0x748] sm:$0xf]  ;;  %v4898_v46 = vld [vmem:[#allocation2 + $0x754] sm:$0xf0]  ;;  %v3970_v50 = vor.u32 %v4866_v42, %v3969_v41  ;;  %v4684_v40 = vld [vmem:[#allocation2 + $0xac] sm:$0xf] }
  0xb6   :  { %1923 = vmatpush.bf16.msrb.mxu1 %v3906_v57  ;;  %v3697_v51 = vld [vmem:[#allocation2 + $0x428] sm:$0xf]  ;;  %v4798_v52 = vld [vmem:[#allocation2 + $0x434] sm:$0xf0]  ;;  %v4098_v54 = vor.u32 %v4898_v46, %v4097_v45  ;;  %v3251_v41 = vld [vmem:[#allocation2 + $0xb8] sm:$0xf0] }
  0xb7   :  { %1937 = vmatpush.bf16.msrb.mxu2 %v4034_v59  ;;  %v3825_v53 = vld [vmem:[#allocation2 + $0x528] sm:$0xf]  ;;  %v4830_v55 = vld [vmem:[#allocation2 + $0x534] sm:$0xf0]  ;;  %v3698_v61 = vor.u32 %v4798_v52, %v3697_v51  ;;  %v4716_v42 = vld [vmem:[#allocation2 + $0x1ac] sm:$0xf]  ;;  %v3254_v52 = vor.u32 %v4684_v40, %v3251_v41 }
  0xb8   :  { %1951 = vmatpush.bf16.msrb.mxu3 %v4162_v63  ;;  %v3953_v56 = vld [vmem:[#allocation2 + $0x628] sm:$0xf]  ;;  %v4862_v57 = vld [vmem:[#allocation2 + $0x634] sm:$0xf0]  ;;  %v3826_v0 = vor.u32 %v4830_v55, %v3825_v53  ;;  %v3379_v46 = vld [vmem:[#allocation2 + $0x1b8] sm:$0xf0] }
  0xb9   :  { %1910 = vmatpush.bf16.msrb.mxu0 %v3762_v6  ;;  %v4081_v59 = vld [vmem:[#allocation2 + $0x728] sm:$0xf]  ;;  %v4894_v60 = vld [vmem:[#allocation2 + $0x734] sm:$0xf0]  ;;  %v3954_v2 = vor.u32 %v4862_v57, %v3953_v56  ;;  %v3635_v51 = vld [vmem:[#allocation2 + $0x3b8] sm:$0xf0]  ;;  %v3382_v53 = vor.u32 %v4716_v42, %v3379_v46 }
  0xba   :  { %1924 = vmatpush.bf16.msrb.mxu1 %v3890_v7  ;;  %v3681_v62 = vld [vmem:[#allocation2 + $0x408] sm:$0xf]  ;;  %v4794_v63 = vld [vmem:[#allocation2 + $0x414] sm:$0xf0]  ;;  %v4082_v6 = vor.u32 %v4894_v60, %v4081_v59  ;;  %v4680_v55 = vld [vmem:[#allocation2 + $0x8c] sm:$0xf] }
  0xbb   :  { %1938 = vmatpush.bf16.msrb.mxu2 %v4018_v8  ;;  %v3809_v3 = vld [vmem:[#allocation2 + $0x508] sm:$0xf]  ;;  %v4826_v4 = vld [vmem:[#allocation2 + $0x514] sm:$0xf0]  ;;  %v3682_v14 = vor.u32 %v4794_v63, %v3681_v62  ;;  %v3235_v56 = vld [vmem:[#allocation2 + $0x98] sm:$0xf0] }
  0xbc   :  { %1952 = vmatpush.bf16.msrb.mxu3 %v4146_v13  ;;  %v3937_v5 = vld [vmem:[#allocation2 + $0x608] sm:$0xf]  ;;  %v4858_v7 = vld [vmem:[#allocation2 + $0x614] sm:$0xf0]  ;;  %v4724_v13 = vld [vmem:[#allocation2 + $0x1ec] sm:$0xf]  ;;  %v3810_v19 = vor.u32 %v4826_v4, %v3809_v3  ;;  %v5238_v3 = vpop.f32.mrf.mxu0 }
  0xbd   :  { %1911 = vmatpush.bf16.msrb.mxu0 %v3746_v20  ;;  %v4065_v8 = vld [vmem:[#allocation2 + $0x708] sm:$0xf]  ;;  %v4890_v9 = vld [vmem:[#allocation2 + $0x714] sm:$0xf0]  ;;  %v3938_v20 = vor.u32 %v4858_v7, %v3937_v5  ;;  %v3414_v25 = vor.u32 %v4724_v13, %v3411_v15  ;;  %v4712_v57 = vld [vmem:[#allocation2 + $0x18c] sm:$0xf] }
  0xbe   :  { %1925 = vmatpush.bf16.msrb.mxu1 %v3874_v21  ;;  %v4788_v21 = vld [vmem:[#allocation2 + $0x3ec] sm:$0xf]  ;;  %v4066_v23 = vor.u32 %v4890_v9, %v4065_v8  ;;  %v3363_v60 = vld [vmem:[#allocation2 + $0x198] sm:$0xf0]  ;;  %v5240_v9 = vpop.f32.mrf.mxu1 }
  0xbf   :  { %1939 = vmatpush.bf16.msrb.mxu2 %v4002_v22  ;;  %v3667_v22 = vld [vmem:[#allocation2 + $0x3f8] sm:$0xf0]  ;;  %v4776_v63 = vld [vmem:[#allocation2 + $0x38c] sm:$0xf]  ;;  %v3366_v4 = vor.u32 %v4712_v57, %v3363_v60 }
  0xc0   :  { %1953 = vmatpush.bf16.msrb.mxu3 %v4130_v26  ;;  %v3542_v26 = vor.u32 %v4756_v16, %v3539_v18  ;;  %v3670_v30 = vor.u32 %v4788_v21, %v3667_v22  ;;  %v3491_v62 = vld [vmem:[#allocation2 + $0x298] sm:$0xf0]  ;;  %v4708_v8 = vld [vmem:[#allocation2 + $0x16c] sm:$0xf] }
  0xc1   :  { %1912 = vmatpush.bf16.msrb.mxu0 %v3730_v32  ;;  %v4752_v32 = vld [vmem:[#allocation2 + $0x2cc] sm:$0xf]  ;;  %v3219_v7 = vld [vmem:[#allocation2 + $0x78] sm:$0xf0] }
  0xc2   :  { %1926 = vmatpush.bf16.msrb.mxu1 %v3858_v33  ;;  %v3523_v33 = vld [vmem:[#allocation2 + $0x2d8] sm:$0xf0]  ;;  %v4740_v13 = vld [vmem:[#allocation2 + $0x26c] sm:$0xf] }
  0xc3   :  { %1940 = vmatpush.bf16.msrb.mxu2 %v3986_v34  ;;  %v4784_v34 = vld [vmem:[#allocation2 + $0x3cc] sm:$0xf]  ;;  %v3347_v12 = vld [vmem:[#allocation2 + $0x178] sm:$0xf0] }
  0xc4   :  { %1954 = vmatpush.bf16.msrb.mxu3 %v4114_v38  ;;  %v3526_v38 = vor.u32 %v4752_v32, %v3523_v33  ;;  %v3654_v45 = vor.u32 %v4784_v34, %v3651_v35  ;;  %v4772_v15 = vld [vmem:[#allocation2 + $0x36c] sm:$0xf]  ;;  %v3603_v16 = vld [vmem:[#allocation2 + $0x378] sm:$0xf0]  ;;  %v5244_v32 = vpop.f32.mrf.mxu3 }
  0xc5   :  { %1913 = vmatpush.bf16.msrb.mxu0 %v3714_v48  ;;  %v4748_v48 = vld [vmem:[#allocation2 + $0x2ac] sm:$0xf]  ;;  %v3203_v22 = vld [vmem:[#allocation2 + $0x58] sm:$0xf0] }
  0xc6   :  { %1927 = vmatpush.bf16.msrb.mxu1 %v3842_v49  ;;  %v3507_v49 = vld [vmem:[#allocation2 + $0x2b8] sm:$0xf0]  ;;  %v4672_v21 = vld [vmem:[#allocation2 + $0x4c] sm:$0xf] }
  0xc7   :  { %1941 = vmatpush.bf16.msrb.mxu2 %v3970_v50  ;;  %v4780_v50 = vld [vmem:[#allocation2 + $0x3ac] sm:$0xf]  ;;  %v3459_v27 = vld [vmem:[#allocation2 + $0x258] sm:$0xf0]  ;;  %v3206_v31 = vor.u32 %v4672_v21, %v3203_v22 }
  0xc8   :  { %1955 = vmatpush.bf16.msrb.mxu3 %v4098_v54  ;;  %v3510_v54 = vor.u32 %v4748_v48, %v3507_v49  ;;  %v3638_v59 = vor.u32 %v4780_v50, %v3635_v51  ;;  %v4768_v28 = vld [vmem:[#allocation2 + $0x34c] sm:$0xf]  ;;  %v3587_v29 = vld [vmem:[#allocation2 + $0x358] sm:$0xf0]  ;;  %v5248_v49 = vpop.f32.mrf.mxu1 }
  0xc9   :  { %1914 = vmatpush.bf16.msrb.mxu0 %v3698_v61  ;;  %v4744_v61 = vld [vmem:[#allocation2 + $0x28c] sm:$0xf]  ;;  %v3315_v40 = vld [vmem:[#allocation2 + $0x138] sm:$0xf0] }
  0xca   :  { %1928 = vmatpush.bf16.msrb.mxu1 %v3826_v0  ;;  %v3619_v0 = vld [vmem:[#allocation2 + $0x398] sm:$0xf0]  ;;  %v3494_v5 = vor.u32 %v4744_v61, %v3491_v62  ;;  %v4668_v35 = vld [vmem:[#allocation2 + $0x2c] sm:$0xf] }
  0xcb   :  { %1942 = vmatpush.bf16.msrb.mxu2 %v3954_v2  ;;  %v3238_v2 = vor.u32 %v4680_v55, %v3235_v56  ;;  %v3622_v11 = vor.u32 %v4776_v63, %v3619_v0  ;;  %v4732_v41 = vld [vmem:[#allocation2 + $0x22c] sm:$0xf]  ;;  %v3443_v42 = vld [vmem:[#allocation2 + $0x238] sm:$0xf0] }
  0xcc   :  { %1956 = vmatpush.bf16.msrb.mxu3 %v4082_v6  ;;  %v4676_v6 = vld [vmem:[#allocation2 + $0x6c] sm:$0xf]  ;;  %v3571_v48 = vld [vmem:[#allocation2 + $0x338] sm:$0xf0] }
  0xcd   :  { %1915 = vmatpush.bf16.msrb.mxu0 %v3682_v14  ;;  %v3475_v14 = vld [vmem:[#allocation2 + $0x278] sm:$0xf0]  ;;  %v3222_v18 = vor.u32 %v4676_v6, %v3219_v7  ;;  %v4764_v46 = vld [vmem:[#allocation2 + $0x32c] sm:$0xf] }
  0xce   :  { %1929 = vmatpush.bf16.msrb.mxu1 %v3810_v19  ;;  %v3350_v19 = vor.u32 %v4708_v8, %v3347_v12  ;;  %v4664_v51 = vld [vmem:[#allocation2 + $0xc] sm:$0xf]  ;;  %v3299_v56 = vld [vmem:[#allocation2 + $0x118] sm:$0xf0] }
  0xcf   :  { %1943 = vmatpush.bf16.msrb.mxu2 %v3938_v20  ;;  %v3478_v20 = vor.u32 %v4740_v13, %v3475_v14  ;;  %v4696_v55 = vld [vmem:[#allocation2 + $0x10c] sm:$0xf]  ;;  %v3427_v60 = vld [vmem:[#allocation2 + $0x218] sm:$0xf0] }
  0xd0   :  { %1957 = vmatpush.bf16.msrb.mxu3 %v4066_v23  ;;  %1916 = vmatmul.bf16.vlgmr.msrb.gmra.mxu0 %v5210_v39  ;;  %v4704_v23 = vld [vmem:[#allocation2 + $0x14c] sm:$0xf]  ;;  %v3555_v62 = vld [vmem:[#allocation2 + $0x318] sm:$0xf0]  ;;  %v3302_v8 = vor.u32 %v4696_v55, %v3299_v56 }
  0xd1   :  { %1964 = vmatpush.bf16.msra.mxu0 %v3286_v24  ;;  %1930 = vmatmul.bf16.vlgmr.msrb.gmra.mxu1 %v5214_v44  ;;  %v3606_v24 = vor.u32 %v4772_v15, %v3603_v16  ;;  %v4728_v57 = vld [vmem:[#allocation2 + $0x20c] sm:$0xf]  ;;  %v3795_v0 = vld [vmem:[#allocation2 + $0x4f8] sm:$0xf0] }
  0xd2   :  { %1978 = vmatpush.bf16.msra.mxu1 %v3414_v25  ;;  %1944 = vmatmul.bf16.vlgmr.msrb.gmra.mxu2 %v5212_v43  ;;  %v3331_v25 = vld [vmem:[#allocation2 + $0x158] sm:$0xf0]  ;;  %v4760_v61 = vld [vmem:[#allocation2 + $0x30c] sm:$0xf] }
  0xd3   :  { %1992 = vmatpush.bf16.msra.mxu2 %v3542_v26  ;;  %1958 = vmatmul.bf16.vlgmr.msrb.gmra.mxu3 %v5216_v47  ;;  %v4736_v26 = vld [vmem:[#allocation2 + $0x24c] sm:$0xf]  ;;  %v3334_v33 = vor.u32 %v4704_v23, %v3331_v25  ;;  %v4051_v7 = vld [vmem:[#allocation2 + $0x6f8] sm:$0xf0]  ;;  %v3558_v15 = vor.u32 %v4760_v61, %v3555_v62 }
  0xd4   :  { %2006 = vmatpush.bf16.msra.mxu3 %v3670_v30  ;;  %v5242_v30 = vpop.f32.mrf.mxu2  ;;  %v3462_v34 = vor.u32 %v4736_v26, %v3459_v27  ;;  %v4820_v63 = vld [vmem:[#allocation2 + $0x4ec] sm:$0xf]  ;;  %v4179_v13 = vld [vmem:[#allocation2 + $0x7f8] sm:$0xf0] }
  0xd5   :  { %1965 = vmatpush.bf16.msra.mxu0 %v3270_v36  ;;  %v3187_v36 = vld [vmem:[#allocation2 + $0x38] sm:$0xf0]  ;;  %v4884_v6 = vld [vmem:[#allocation2 + $0x6ec] sm:$0xf]  ;;  %v3798_v16 = vor.u32 %v4820_v63, %v3795_v0 }
  0xd6   :  { %1979 = vmatpush.bf16.msra.mxu1 %v3398_v37  ;;  %v4700_v37 = vld [vmem:[#allocation2 + $0x12c] sm:$0xf]  ;;  %v3190_v50 = vor.u32 %v4668_v35, %v3187_v36  ;;  %v3779_v22 = vld [vmem:[#allocation2 + $0x4d8] sm:$0xf0] }
  0xd7   :  { %1993 = vmatpush.bf16.msra.mxu2 %v3526_v38  ;;  %v3590_v38 = vor.u32 %v4768_v28, %v3587_v29  ;;  %v4916_v12 = vld [vmem:[#allocation2 + $0x7ec] sm:$0xf]  ;;  %v3907_v25 = vld [vmem:[#allocation2 + $0x5d8] sm:$0xf0] }
  0xd8   :  { %2007 = vmatpush.bf16.msra.mxu3 %v3654_v45  ;;  %v5246_v45 = vpop.f32.mrf.mxu0  ;;  %v4816_v21 = vld [vmem:[#allocation2 + $0x4cc] sm:$0xf]  ;;  %v4035_v27 = vld [vmem:[#allocation2 + $0x6d8] sm:$0xf0] }
  0xd9   :  { %1966 = vmatpush.bf16.msra.mxu0 %v3254_v52  ;;  %v3171_v52 = vld [vmem:[#allocation2 + $0x18] sm:$0xf0]  ;;  %v4848_v23 = vld [vmem:[#allocation2 + $0x5cc] sm:$0xf] }
  0xda   :  { %1980 = vmatpush.bf16.msra.mxu1 %v3382_v53  ;;  %v3318_v53 = vor.u32 %v4700_v37, %v3315_v40  ;;  %v4880_v26 = vld [vmem:[#allocation2 + $0x6cc] sm:$0xf]  ;;  %v3910_v35 = vor.u32 %v4848_v23, %v3907_v25  ;;  %v3747_v56 = vld [vmem:[#allocation2 + $0x498] sm:$0xf0] }
  0xdb   :  { %1994 = vmatpush.bf16.msra.mxu2 %v3510_v54  ;;  %v3446_v54 = vor.u32 %v4732_v41, %v3443_v42  ;;  %v4912_v29 = vld [vmem:[#allocation2 + $0x7cc] sm:$0xf]  ;;  %v4038_v36 = vor.u32 %v4880_v26, %v4035_v27  ;;  %v3891_v42 = vld [vmem:[#allocation2 + $0x5b8] sm:$0xf0] }
  0xdc   :  { %2008 = vmatpush.bf16.msra.mxu3 %v3638_v59  ;;  %v3574_v59 = vor.u32 %v4764_v46, %v3571_v48  ;;  %v5250_v14 = vpop.f32.mrf.mxu2  ;;  %v4812_v37 = vld [vmem:[#allocation2 + $0x4ac] sm:$0xf]  ;;  %v4019_v48 = vld [vmem:[#allocation2 + $0x6b8] sm:$0xf0] }
  0xdd   :  { %1967 = vmatpush.bf16.msra.mxu0 %v3238_v2  ;;  %v4852_v2 = vld [vmem:[#allocation2 + $0x5ec] sm:$0xf]  ;;  %v4131_v63 = vld [vmem:[#allocation2 + $0x798] sm:$0xf0] }
  0xde   :  { %1981 = vmatpush.bf16.msra.mxu1 %v3366_v4  ;;  %v3174_v4 = vor.u32 %v4664_v51, %v3171_v52  ;;  %v4844_v40 = vld [vmem:[#allocation2 + $0x5ac] sm:$0xf]  ;;  %v4147_v51 = vld [vmem:[#allocation2 + $0x7b8] sm:$0xf0] }
  0xdf   :  { %1995 = vmatpush.bf16.msra.mxu2 %v3494_v5  ;;  %v3923_v5 = vld [vmem:[#allocation2 + $0x5f8] sm:$0xf0]  ;;  %v4876_v46 = vld [vmem:[#allocation2 + $0x6ac] sm:$0xf] }
  0xe0   :  { %2009 = vmatpush.bf16.msra.mxu3 %v3622_v11  ;;  %v3430_v11 = vor.u32 %v4728_v57, %v3427_v60  ;;  %v5254_v28 = vpop.f32.mrf.mxu0  ;;  %v4808_v55 = vld [vmem:[#allocation2 + $0x48c] sm:$0xf]  ;;  %v3875_v60 = vld [vmem:[#allocation2 + $0x598] sm:$0xf0] }
  0xe1   :  { %1968 = vmatpush.bf16.msra.mxu0 %v3222_v18  ;;  %v5252_v18 = vpop.f32.mrf.mxu3  ;;  %v4872_v61 = vld [vmem:[#allocation2 + $0x68c] sm:$0xf]  ;;  %v3843_v27 = vld [vmem:[#allocation2 + $0x558] sm:$0xf0] }
  0xe2   :  { %1982 = vmatpush.bf16.msra.mxu1 %v3350_v19  ;;  %v3926_v19 = vor.u32 %v4852_v2, %v3923_v5  ;;  %v4804_v5 = vld [vmem:[#allocation2 + $0x46c] sm:$0xf] }
  0xe3   :  { %1996 = vmatpush.bf16.msra.mxu2 %v3478_v20  ;;  %v4054_v20 = vor.u32 %v4884_v6, %v4051_v7  ;;  %v3731_v6 = vld [vmem:[#allocation2 + $0x478] sm:$0xf0]  ;;  %v4836_v7 = vld [vmem:[#allocation2 + $0x56c] sm:$0xf] }
  0xe4   :  { %2010 = vmatpush.bf16.msra.mxu3 %v3606_v24  ;;  %v4182_v24 = vor.u32 %v4916_v12, %v4179_v13  ;;  %v5262_v57 = vpop.f32.mrf.mxu2  ;;  %v3859_v12 = vld [vmem:[#allocation2 + $0x578] sm:$0xf0]  ;;  %v4868_v13 = vld [vmem:[#allocation2 + $0x66c] sm:$0xf] }
  0xe5   :  { %1969 = vmatpush.bf16.msra.mxu0 %v3206_v31  ;;  %v4163_v31 = vld [vmem:[#allocation2 + $0x7d8] sm:$0xf0]  ;;  %v4800_v23 = vld [vmem:[#allocation2 + $0x44c] sm:$0xf] }
  0xe6   :  { %1983 = vmatpush.bf16.msra.mxu1 %v3334_v33  ;;  %v5256_v33 = vpop.f32.mrf.mxu1  ;;  %v4166_v41 = vor.u32 %v4912_v29, %v4163_v31  ;;  %v4832_v25 = vld [vmem:[#allocation2 + $0x54c] sm:$0xf]  ;;  %v3971_v31 = vld [vmem:[#allocation2 + $0x658] sm:$0xf0] }
  0xe7   :  { %1997 = vmatpush.bf16.msra.mxu2 %v3462_v34  ;;  %v3782_v34 = vor.u32 %v4816_v21, %v3779_v22  ;;  %v3862_v21 = vor.u32 %v4836_v7, %v3859_v12  ;;  %v4864_v29 = vld [vmem:[#allocation2 + $0x64c] sm:$0xf] }
  0xe8   :  { %2011 = vmatpush.bf16.msra.mxu3 %v3590_v38  ;;  %v3763_v38 = vld [vmem:[#allocation2 + $0x4b8] sm:$0xf0]  ;;  %v5266_v0 = vpop.f32.mrf.mxu0  ;;  %v4856_v7 = vld [vmem:[#allocation2 + $0x60c] sm:$0xf] }
  0xe9   :  { %1970 = vmatpush.bf16.msra.mxu0 %v3190_v50  ;;  %v4908_v50 = vld [vmem:[#allocation2 + $0x7ac] sm:$0xf]  ;;  %v3766_v52 = vor.u32 %v4812_v37, %v3763_v38  ;;  %v5264_v62 = vpop.f32.mrf.mxu3 }
  0xea   :  { %1984 = vmatpush.bf16.msra.mxu1 %v3318_v53  ;;  %v3894_v53 = vor.u32 %v4844_v40, %v3891_v42  ;;  %v3974_v42 = vor.u32 %v4864_v29, %v3971_v31  ;;  %v4888_v12 = vld [vmem:[#allocation2 + $0x70c] sm:$0xf] }
  0xeb   :  { %1998 = vmatpush.bf16.msra.mxu2 %v3446_v54  ;;  %v4022_v54 = vor.u32 %v4876_v46, %v4019_v48  ;;  %v4796_v48 = vld [vmem:[#allocation2 + $0x42c] sm:$0xf] }
  0xec   :  { %2012 = vmatpush.bf16.msra.mxu3 %v3574_v59  ;;  %v4150_v59 = vor.u32 %v4908_v50, %v4147_v51  ;;  %v5275_v37 = vpop.f32.mrf.mxu2  ;;  %v3699_v50 = vld [vmem:[#allocation2 + $0x438] sm:$0xf0]  ;;  %v4828_v51 = vld [vmem:[#allocation2 + $0x52c] sm:$0xf] }
  0xed   :  { %1971 = vmatpush.bf16.msra.mxu0 %v3174_v4 }
  0xee   :  { %1985 = vmatpush.bf16.msra.mxu1 %v3302_v8  ;;  %v5268_v8 = vpop.f32.mrf.mxu1 }
  0xef   :  { %1999 = vmatpush.bf16.msra.mxu2 %v3430_v11 }
  0xf0   :  { %2013 = vmatpush.bf16.msra.mxu3 %v3558_v15  ;;  %1972 = vmatmul.bf16.vlgmr.msra.gmra.mxu0 %v5159_v58  ;;  %v4003_v58 = vld [vmem:[#allocation2 + $0x698] sm:$0xf0]  ;;  %v1749_v46 = vpop.f32.mrf.mxu0 }
  0xf1   :  { %2020 = vmatpush.bf16.msrb.mxu0 %v3798_v16  ;;  %1986 = vmatmul.bf16.vlgmr.msra.gmra.mxu1 %v5177_v10  ;;  %v3750_v10 = vor.u32 %v4808_v55, %v3747_v56  ;;  %v4006_v4 = vor.u32 %v4872_v61, %v4003_v58  ;;  %v3987_v15 = vld [vmem:[#allocation2 + $0x678] sm:$0xf0]  ;;  %v4900_v16 = vld [vmem:[#allocation2 + $0x76c] sm:$0xf]  ;;  %v5277_v40 = vpop.f32.mrf.mxu3  ;;  %v3702_v58 = vor.u32 %v4796_v48, %v3699_v50 }
  0xf2   :  { %2034 = vmatpush.bf16.msrb.mxu1 %v3926_v19  ;;  %2000 = vmatmul.bf16.vlgmr.msra.gmra.mxu2 %v5164_v1  ;;  %v4840_v1 = vld [vmem:[#allocation2 + $0x58c] sm:$0xf]  ;;  %v4115_v19 = vld [vmem:[#allocation2 + $0x778] sm:$0xf0]  ;;  %v3990_v22 = vor.u32 %v4868_v13, %v3987_v15  ;;  %v4269_v15 = vld [vmem:[#allocation4 + $0xa8] sm:$0xf] }
  0xf3   :  { %2048 = vmatpush.bf16.msrb.mxu2 %v4054_v20  ;;  %2014 = vmatmul.bf16.vlgmr.msra.gmra.mxu3 %v5182_v17  ;;  %v4904_v17 = vld [vmem:[#allocation2 + $0x78c] sm:$0xf]  ;;  %v3878_v2 = vor.u32 %v4840_v1, %v3875_v60  ;;  %v3734_v20 = vor.u32 %v4804_v5, %v3731_v6  ;;  %v4118_v26 = vor.u32 %v4900_v16, %v4115_v19  ;;  %v3955_v55 = vld [vmem:[#allocation2 + $0x638] sm:$0xf0]  ;;  %v4941_v16 = vld [vmem:[#allocation4 + $0xb0] sm:$0xf0] }
  0xf4   :  { %2062 = vmatpush.bf16.msrb.mxu3 %v4182_v24  ;;  %v4134_v11 = vor.u32 %v4904_v17, %v4131_v63  ;;  %v3715_v24 = vld [vmem:[#allocation2 + $0x458] sm:$0xf0]  ;;  %v4892_v1 = vld [vmem:[#allocation2 + $0x72c] sm:$0xf] }
  0xf5   :  { %2021 = vmatpush.bf16.msrb.mxu0 %v3782_v34  ;;  %v4896_v34 = vld [vmem:[#allocation2 + $0x74c] sm:$0xf]  ;;  %v3718_v38 = vor.u32 %v4800_v23, %v3715_v24  ;;  %v3811_v5 = vld [vmem:[#allocation2 + $0x518] sm:$0xf0]  ;;  %v4965_v23 = vld [vmem:[#allocation4 + $0x170] sm:$0xf0]  ;;  %v1777_v24 = vpop.f32.mrf.mxu2 }
  0xf6   :  { %2035 = vmatpush.bf16.msrb.mxu1 %v3910_v35  ;;  %v4099_v35 = vld [vmem:[#allocation2 + $0x758] sm:$0xf0]  ;;  %v1763_v56 = vpop.f32.mrf.mxu1  ;;  %v4792_v17 = vld [vmem:[#allocation2 + $0x40c] sm:$0xf] }
  0xf7   :  { %2049 = vmatpush.bf16.msrb.mxu2 %v4038_v36  ;;  %v5273_v36 = vld [vmem:[%s5404_s2] sm:$0xf]  ;;  %v4067_v13 = vld [vmem:[#allocation2 + $0x718] sm:$0xf0] }
  0xf8   :  { %2063 = vmatpush.bf16.msrb.mxu3 %v4166_v41  ;;  %v3846_v41 = vor.u32 %v4832_v25, %v3843_v27  ;;  %v340_v60 = vperm.slane %v5273_v36, 0  ;;  %v341_v61 = vperm.slane %v5273_v36, 1  ;;  %v4070_v31 = vor.u32 %v4888_v12, %v4067_v13  ;;  %v4962_v48 = vld [vmem:[#allocation4 + $0x158] sm:$0xf0] }
  0xf9   :  { %2022 = vmatpush.bf16.msrb.mxu0 %v3766_v52  ;;  %v4102_v52 = vor.u32 %v4896_v34, %v4099_v35  ;;  %v1791_v29 = vpop.f32.mrf.mxu3  ;;  %v4270_v34 = vor.u32 %v4941_v16, %v4269_v15 }
  0xfa   :  { %2036 = vmatpush.bf16.msrb.mxu1 %v3894_v53  ;;  %v3827_v53 = vld [vmem:[#allocation2 + $0x538] sm:$0xf0]  ;;  %v1638_v19 = vadd.f32 %v5238_v3, %v340_v60  ;;  %v1750_v25 = vadd.f32 %v1749_v46, %v341_v61 }
  0xfb   :  { %2050 = vmatpush.bf16.msrb.mxu2 %v4022_v54  ;;  %v4860_v54 = vld [vmem:[#allocation2 + $0x62c] sm:$0xf]  ;;  %v3830_v63 = vor.u32 %v4828_v51, %v3827_v53  ;;  %v4938_v3 = vld [vmem:[#allocation4 + $0x98] sm:$0xf0]  ;;  %v4245_v53 = vld [vmem:[#allocation4 + $0x78] sm:$0xf] }
  0xfc   :  { %2064 = vmatpush.bf16.msrb.mxu3 %v4150_v59  ;;  %v4083_v59 = vld [vmem:[#allocation2 + $0x738] sm:$0xf0]  ;;  %v1764_v51 = vadd.f32 %v1763_v56, %v1750_v25  ;;  %v4959_v56 = vld [vmem:[#allocation4 + $0x140] sm:$0xf0]  ;;  %v4317_v25 = vld [vmem:[#allocation4 + $0x108] sm:$0xf] }
  0xfd   :  { %2023 = vmatpush.bf16.msrb.mxu0 %v3750_v10  ;;  %v3958_v10 = vor.u32 %v4860_v54, %v3955_v55  ;;  %v4086_v6 = vor.u32 %v4892_v1, %v4083_v59  ;;  %v4935_v1 = vld [vmem:[#allocation4 + $0x80] sm:$0xf0]  ;;  %v4989_v59 = vld [vmem:[#allocation4 + $0x230] sm:$0xf0] }
  0xfe   :  { %2037 = vmatpush.bf16.msrb.mxu1 %v3878_v2  ;;  %v3683_v2 = vld [vmem:[#allocation2 + $0x418] sm:$0xf0]  ;;  %v1765_v50 = vpop.f32.mrf.mxu1 }
  0xff   :  { %2051 = vmatpush.bf16.msrb.mxu2 %v4006_v4  ;;  %v4824_v4 = vld [vmem:[#allocation2 + $0x50c] sm:$0xf] }
 0x100   :  { %2065 = vmatpush.bf16.msrb.mxu3 %v4134_v11  ;;  %v3939_v11 = vld [vmem:[#allocation2 + $0x618] sm:$0xf0] }
 0x101   :  { %2024 = vmatpush.bf16.msrb.mxu0 %v3734_v20  ;;  %v1640_v20 = vadd.f32 %v5246_v45, %v340_v60  ;;  %v3942_v27 = vor.u32 %v4856_v7, %v3939_v11  ;;  %v1652_v45 = vadd.f32 %v5240_v9, %v1638_v19  ;;  %v4461_v9 = vld [vmem:[#allocation4 + $0x228] sm:$0xf]  ;;  %v4329_v7 = vld [vmem:[#allocation4 + $0x120] sm:$0xf]  ;;  %v4956_v11 = vld [vmem:[#allocation4 + $0x128] sm:$0xf0] }
 0x102   :  { %2038 = vmatpush.bf16.msrb.mxu1 %v3862_v21  ;;  %v3686_v21 = vor.u32 %v4792_v17, %v3683_v2  ;;  %v4221_v19 = vld [vmem:[#allocation4 + $0x48] sm:$0xf] }
 0x103   :  { %2052 = vmatpush.bf16.msrb.mxu2 %v3990_v22  ;;  %v4365_v22 = vld [vmem:[#allocation4 + $0x168] sm:$0xf]  ;;  %v1654_v46 = vadd.f32 %v5248_v49, %v1640_v20  ;;  %v1666_v60 = vadd.f32 %v5242_v30, %v1652_v45  ;;  %v4341_v49 = vld [vmem:[#allocation4 + $0x138] sm:$0xf]  ;;  %v4980_v45 = vld [vmem:[#allocation4 + $0x1e8] sm:$0xf0] }
 0x104   :  { %2066 = vmatpush.bf16.msrb.mxu3 %v4118_v26  ;;  %v3814_v26 = vor.u32 %v4824_v4, %v3811_v5  ;;  %v4366_v35 = vor.u32 %v4965_v23, %v4365_v22  ;;  %v4342_v30 = vor.u32 %v4959_v56, %v4341_v49  ;;  %v1793_v4 = vpop.f32.mrf.mxu3  ;;  %v4449_v5 = vld [vmem:[#allocation4 + $0x210] sm:$0xf]  ;;  %v4929_v22 = vld [vmem:[#allocation4 + $0x50] sm:$0xf0]  ;;  %v4437_v23 = vld [vmem:[#allocation4 + $0x1f8] sm:$0xf] }
 0x105   :  { %2025 = vmatpush.bf16.msrb.mxu0 %v3718_v38  ;;  %v1751_v38 = vpop.f32.mrf.mxu0  ;;  %v1668_v17 = vadd.f32 %v5250_v14, %v1654_v46  ;;  %v4977_v49 = vld [vmem:[#allocation4 + $0x1d0] sm:$0xf0] }
 0x106   :  { %2039 = vmatpush.bf16.msrb.mxu1 %v3846_v41  ;;  %v4257_v41 = vld [vmem:[#allocation4 + $0x90] sm:$0xf]  ;;  %v1752_v54 = vadd.f32 %v1751_v38, %v341_v61  ;;  %v1779_v61 = vpop.f32.mrf.mxu2 }
 0x107   :  { %2053 = vmatpush.bf16.msrb.mxu2 %v3974_v42  ;;  %v4353_v42 = vld [vmem:[#allocation4 + $0x150] sm:$0xf]  ;;  %v1682_v12 = vadd.f32 %v5252_v18, %v1668_v17  ;;  %v4293_v17 = vld [vmem:[#allocation4 + $0xd8] sm:$0xf] }
 0x108   :  { %2067 = vmatpush.bf16.msrb.mxu3 %v4102_v52  ;;  %v4258_v52 = vor.u32 %v4938_v3, %v4257_v41  ;;  %v4354_v55 = vor.u32 %v4962_v48, %v4353_v42  ;;  %v1766_v2 = vadd.f32 %v1765_v50, %v1752_v54  ;;  %v4926_v41 = vld [vmem:[#allocation4 + $0x38] sm:$0xf0]  ;;  %v4425_v3 = vld [vmem:[#allocation4 + $0x1e0] sm:$0xf] }
 0x109   :  { %2026 = vmatpush.bf16.msrb.mxu0 %v3702_v58  ;;  %v4462_v58 = vor.u32 %v4989_v59, %v4461_v9  ;;  %v1696_v18 = vadd.f32 %v5266_v0, %v1682_v12  ;;  %v4950_v50 = vld [vmem:[#allocation4 + $0xf8] sm:$0xf0]  ;;  %v4426_v46 = vor.u32 %v4980_v45, %v4425_v3 }
 0x10a   :  { %2040 = vmatpush.bf16.msrb.mxu1 %v3830_v63  ;;  %v1778_v63 = vadd.f32 %v1777_v24, %v1764_v51  ;;  %v1780_v20 = vadd.f32 %v1779_v61, %v1766_v2  ;;  %v4983_v24 = vld [vmem:[#allocation4 + $0x200] sm:$0xf0]  ;;  %v4920_v2 = vld [vmem:[#allocation4 + $0x8] sm:$0xf0]  ;;  %v4934_v45 = vld [vmem:[#allocation4 + $0x7c] sm:$0xf] }
 0x10b   :  { %2054 = vmatpush.bf16.msrb.mxu2 %v3958_v10  ;;  %v4233_v10 = vld [vmem:[#allocation4 + $0x60] sm:$0xf]  ;;  %v1710_v51 = vadd.f32 %v5268_v8, %v1696_v18  ;;  %v4947_v8 = vld [vmem:[#allocation4 + $0xe0] sm:$0xf0] }
 0x10c   :  { %2068 = vmatpush.bf16.msrb.mxu3 %v4086_v6  ;;  %v1680_v6 = vadd.f32 %v5244_v32, %v1666_v60  ;;  %v4923_v60 = vld [vmem:[#allocation4 + $0x20] sm:$0xf0] }
 0x10d   :  { %2027 = vmatpush.bf16.msrb.mxu0 %v3686_v21  ;;  %v1805_v13 = vpop.f32.mrf.mxu0  ;;  %v4330_v21 = vor.u32 %v4956_v11, %v4329_v7  ;;  %v4944_v7 = vld [vmem:[#allocation4 + $0xc8] sm:$0xf0] }
 0x10e   :  { %2041 = vmatpush.bf16.msrb.mxu1 %v3814_v26  ;;  %v1819_v16 = vpop.f32.mrf.mxu1  ;;  %v1694_v32 = vadd.f32 %v5254_v28, %v1680_v6  ;;  %v4953_v26 = vld [vmem:[#allocation4 + $0x110] sm:$0xf0]  ;;  %v4305_v28 = vld [vmem:[#allocation4 + $0xf0] sm:$0xf]  ;;  %v4940_v11 = vld [vmem:[#allocation4 + $0xac] sm:$0xf] }
 0x10f   :  { %2055 = vmatpush.bf16.msrb.mxu2 %v3942_v27  ;;  %v4438_v27 = vor.u32 %v4983_v24, %v4437_v23  ;;  %v4318_v38 = vor.u32 %v4953_v26, %v4317_v25  ;;  %v4306_v59 = vor.u32 %v4950_v50, %v4305_v28  ;;  %v4389_v24 = vld [vmem:[#allocation4 + $0x198] sm:$0xf]  ;;  %v4937_v26 = vld [vmem:[#allocation4 + $0x94] sm:$0xf]  ;;  %v4247_v50 = vld [vmem:[#allocation4 + $0x84] sm:$0xf0] }
 0x110   :  { %2069 = vmatpush.bf16.msrb.mxu3 %v4070_v31  ;;  %2028 = vmatmul.bf16.vlgmr.msrb.gmra.mxu0 %v5210_v39  ;;  %v4246_v39 = vor.u32 %v4935_v1, %v4245_v53  ;;  %v4222_v31 = vor.u32 %v4929_v22, %v4221_v19  ;;  %v1708_v42 = vadd.f32 %v5256_v33, %v1694_v32  ;;  %v4413_v33 = vld [vmem:[#allocation4 + $0x1c8] sm:$0xf]  ;;  %v4367_v19 = vld [vmem:[#allocation4 + $0x174] sm:$0xf0] }
 0x111   :  { %2736 = vmatpush.bf16.msra.mxu0 %v4270_v34  ;;  %2042 = vmatmul.bf16.vlgmr.msrb.gmra.mxu1 %v5214_v44  ;;  %v4932_v44 = vld [vmem:[#allocation4 + $0x68] sm:$0xf0]  ;;  %v4209_v34 = vld [vmem:[#allocation4 + $0x30] sm:$0xf]  ;;  %v1724_v1 = vadd.f32 %v5275_v37, %v1710_v51 }
 0x112   :  { %2750 = vmatpush.bf16.msra.mxu1 %v4366_v35  ;;  %2056 = vmatmul.bf16.vlgmr.msrb.gmra.mxu2 %v5212_v43  ;;  %v4986_v43 = vld [vmem:[#allocation4 + $0x218] sm:$0xf0]  ;;  %v4234_v15 = vor.u32 %v4932_v44, %v4233_v10  ;;  %v1794_v35 = vadd.f32 %v1793_v4, %v1780_v20  ;;  %v4210_v54 = vor.u32 %v4926_v41, %v4209_v34  ;;  %v4185_v10 = vld [vmem:[#allocation4] sm:$0xf]  ;;  %v4961_v34 = vld [vmem:[#allocation4 + $0x154] sm:$0xf] }
 0x113   :  { %2070 = vmatmul.bf16.vlgmr.msrb.gmra.mxu3 %v5216_v47  ;;  %2764 = vmatpush.bf16.msra.mxu2 %v4462_v58  ;;  %v4450_v14 = vor.u32 %v4986_v43, %v4449_v5  ;;  %v1792_v47 = vadd.f32 %v1791_v29, %v1778_v63  ;;  %v1722_v56 = vadd.f32 %v5262_v57, %v1708_v42  ;;  %v4281_v44 = vld [vmem:[#allocation4 + $0xc0] sm:$0xf]  ;;  %v4401_v5 = vld [vmem:[#allocation4 + $0x1b0] sm:$0xf]  ;;  %v4974_v43 = vld [vmem:[#allocation4 + $0x1b8] sm:$0xf0] }
 0x114   :  { %v4414_v63 = vor.u32 %v4977_v49, %v4413_v33  ;;  %v1738_v37 = vadd.f32 %v5277_v40, %v1724_v1  ;;  %v4294_v4 = vor.u32 %v4947_v8, %v4293_v17  ;;  %v4402_v12 = vor.u32 %v4974_v43, %v4401_v5  ;;  %v4377_v42 = vld [vmem:[#allocation4 + $0x180] sm:$0xf]  ;;  %v4988_v51 = vld [vmem:[#allocation4 + $0x22c] sm:$0xf]  ;;  %v4931_v1 = vld [vmem:[#allocation4 + $0x64] sm:$0xf] }
 0x115   :  { %2737 = vmatpush.bf16.msra.mxu0 %v4258_v52  ;;  %v1806_v29 = vadd.f32 %v1805_v13, %v1792_v47  ;;  %v1833_v48 = vpop.f32.mrf.mxu2  ;;  %v1807_v52 = vpop.f32.mrf.mxu0  ;;  %v1736_v57 = vadd.f32 %v5264_v62, %v1722_v56  ;;  %v4186_v40 = vor.u32 %v4920_v2, %v4185_v10  ;;  %v4282_v22 = vor.u32 %v4944_v7, %v4281_v44  ;;  %v4971_v62 = vld [vmem:[#allocation4 + $0x1a0] sm:$0xf0]  ;;  %v4451_v33 = vld [vmem:[#allocation4 + $0x21c] sm:$0xf0]  ;;  %v4331_v56 = vld [vmem:[#allocation4 + $0x12c] sm:$0xf0] }
 0x116   :  { %2751 = vmatpush.bf16.msra.mxu1 %v4354_v55  ;;  %v1847_v53 = vpop.f32.mrf.mxu3  ;;  %v4197_v55 = vld [vmem:[#allocation4 + $0x18] sm:$0xf]  ;;  %v1808_v9 = vadd.f32 %v1807_v52, %v1794_v35  ;;  %v1821_v58 = vpop.f32.mrf.mxu1  ;;  %v2080_v20 = vmax.f32 %v1738_v37, 0.0  ;;  %v4390_v18 = vor.u32 %v4971_v62, %v4389_v24  ;;  %v4355_v35 = vld [vmem:[#allocation4 + $0x15c] sm:$0xf0]  ;;  %v342_v24 = vperm.slane %v5273_v36, 2 }
 0x117   :  { %2765 = vmatpush.bf16.msra.mxu2 %v4450_v14  ;;  %v1820_v0 = vadd.f32 %v1819_v16, %v1806_v29  ;;  %v4198_v61 = vor.u32 %v4923_v60, %v4197_v55  ;;  %v4271_v14 = vld [vmem:[#allocation4 + $0xb4] sm:$0xf0]  ;;  %v4964_v16 = vld [vmem:[#allocation4 + $0x16c] sm:$0xf]  ;;  %v2076_v32 = vmax.f32 %v1736_v57, 0.0  ;;  %v4358_v28 = vor.u32 %v4961_v34, %v4355_v35 }
 0x118   :  { %v4274_v23 = vor.u32 %v4940_v11, %v4271_v14  ;;  %v4370_v25 = vor.u32 %v4964_v16, %v4367_v19  ;;  %v4958_v52 = vld [vmem:[#allocation4 + $0x13c] sm:$0xf]  ;;  %v4250_v55 = vor.u32 %v4934_v45, %v4247_v50  ;;  %v4985_v60 = vld [vmem:[#allocation4 + $0x214] sm:$0xf]  ;;  %v4955_v49 = vld [vmem:[#allocation4 + $0x124] sm:$0xf] }
 0x119   :  { %2738 = vmatpush.bf16.msra.mxu0 %v4246_v39  ;;  %v1834_v39 = vadd.f32 %v1833_v48, %v1820_v0  ;;  %v4968_v48 = vld [vmem:[#allocation4 + $0x188] sm:$0xf0]  ;;  %v4463_v0 = vld [vmem:[#allocation4 + $0x234] sm:$0xf0]  ;;  %v4439_v10 = vld [vmem:[#allocation4 + $0x204] sm:$0xf0] }
 0x11a   :  { %2752 = vmatpush.bf16.msra.mxu1 %v4342_v30  ;;  %v1822_v30 = vadd.f32 %v1821_v58, %v1808_v9  ;;  %v4454_v58 = vor.u32 %v4985_v60, %v4451_v33  ;;  %v4928_v8 = vld [vmem:[#allocation4 + $0x4c] sm:$0xf]  ;;  %v4319_v37 = vld [vmem:[#allocation4 + $0x114] sm:$0xf0]  ;;  %v4925_v44 = vld [vmem:[#allocation4 + $0x34] sm:$0xf] }
 0x11b   :  { %2766 = vmatpush.bf16.msra.mxu2 %v4438_v27  ;;  %v1848_v47 = vadd.f32 %v1847_v53, %v1834_v39  ;;  %v4259_v27 = vld [vmem:[#allocation4 + $0x9c] sm:$0xf0]  ;;  %v4343_v53 = vld [vmem:[#allocation4 + $0x144] sm:$0xf0]  ;;  %v4223_v39 = vld [vmem:[#allocation4 + $0x54] sm:$0xf0] }
 0x11c   :  { %v4262_v3 = vor.u32 %v4937_v26, %v4259_v27  ;;  %v4346_v9 = vor.u32 %v4958_v52, %v4343_v53  ;;  %v4952_v2 = vld [vmem:[#allocation4 + $0x10c] sm:$0xf]  ;;  %v4211_v43 = vld [vmem:[#allocation4 + $0x3c] sm:$0xf0]  ;;  %v4979_v57 = vld [vmem:[#allocation4 + $0x1e4] sm:$0xf] }
 0x11d   :  { %2739 = vmatpush.bf16.msra.mxu0 %v4234_v15  ;;  %v1835_v6 = vpop.f32.mrf.mxu2  ;;  %v2077_v29 = vmax.f32 %v1848_v47, 0.0  ;;  %v4322_v5 = vor.u32 %v4952_v2, %v4319_v37  ;;  %v4949_v7 = vld [vmem:[#allocation4 + $0xf4] sm:$0xf]  ;;  %v4307_v11 = vld [vmem:[#allocation4 + $0xfc] sm:$0xf0] }
 0x11e   :  { %2753 = vmatpush.bf16.msra.mxu1 %v4330_v21  ;;  %v1836_v13 = vadd.f32 %v1835_v6, %v1822_v30  ;;  %v1849_v15 = vpop.f32.mrf.mxu3  ;;  %v4427_v6 = vld [vmem:[#allocation4 + $0x1ec] sm:$0xf0]  ;;  %v4922_v47 = vld [vmem:[#allocation4 + $0x1c] sm:$0xf]  ;;  %v4976_v16 = vld [vmem:[#allocation4 + $0x1cc] sm:$0xf] }
 0x11f   :  { %2767 = vmatpush.bf16.msra.mxu2 %v4426_v46  ;;  %v4378_v46 = vor.u32 %v4968_v48, %v4377_v42  ;;  %v4430_v14 = vor.u32 %v4979_v57, %v4427_v6  ;;  %v4415_v19 = vld [vmem:[#allocation4 + $0x1d4] sm:$0xf0]  ;;  %v4943_v27 = vld [vmem:[#allocation4 + $0xc4] sm:$0xf]  ;;  %v4277_v34 = vld [vmem:[#allocation4 + $0xb0] sm:$0xf] }
 0x120   :  { %v1850_v21 = vadd.f32 %v1849_v15, %v1836_v13  ;;  %v4310_v13 = vor.u32 %v4949_v7, %v4307_v11  ;;  %v4199_v15 = vld [vmem:[#allocation4 + $0x24] sm:$0xf0]  ;;  %v4942_v35 = vld [vmem:[#allocation4 + $0xb8] sm:$0xf0]  ;;  %v4373_v45 = vld [vmem:[#allocation4 + $0x170] sm:$0xf] }
 0x121   :  { %2740 = vmatpush.bf16.msra.mxu0 %v4222_v31  ;;  %v4202_v62 = vor.u32 %v4922_v47, %v4199_v15  ;;  %v4966_v42 = vld [vmem:[#allocation4 + $0x178] sm:$0xf0]  ;;  %v4278_v50 = vor.u32 %v4942_v35, %v4277_v34  ;;  %v4963_v60 = vld [vmem:[#allocation4 + $0x160] sm:$0xf0]  ;;  %v4557_v37 = vld [vmem:[#allocation4 + $0x2e8] sm:$0xf] }
 0x122   :  { %2754 = vmatpush.bf16.msra.mxu1 %v4318_v38  ;;  %v2081_v31 = vmax.f32 %v1850_v21, 0.0  ;;  %v5301_v38 = vpack.c.bf16 %v2080_v20, %v2076_v32  ;;  %v4946_v20 = vld [vmem:[#allocation4 + $0xdc] sm:$0xf]  ;;  %v4295_v21 = vld [vmem:[#allocation4 + $0xe4] sm:$0xf0]  ;;  %v4374_v53 = vor.u32 %v4966_v42, %v4373_v45 }
 0x123   :  { %2768 = vmatpush.bf16.msra.mxu2 %v4414_v63  ;;  %v4334_v63 = vor.u32 %v4955_v49, %v4331_v56  ;;  %v4919_v32 = vld [vmem:[#allocation4 + $0x4] sm:$0xf]  ;;  %v4298_v26 = vor.u32 %v4946_v20, %v4295_v21  ;;  %v4253_v49 = vld [vmem:[#allocation4 + $0x80] sm:$0xf]  ;;  %v4933_v47 = vld [vmem:[#allocation4 + $0x70] sm:$0xf0] }
 0x124   :  { %v5303_v41 = vpack.c.bf16 %v2081_v31, %v2077_v29  ;;  %v4403_v29 = vld [vmem:[#allocation4 + $0x1bc] sm:$0xf0]  ;;  %v4283_v31 = vld [vmem:[#allocation4 + $0xcc] sm:$0xf0]  ;;  %v5004_v34 = vld [vmem:[#allocation4 + $0x2a8] sm:$0xf0] }
 0x125   :  { %2741 = vmatpush.bf16.msra.mxu0 %v4210_v54  ;;  %v4466_v54 = vor.u32 %v4988_v51, %v4463_v0  ;;  %v4970_v51 = vld [vmem:[#allocation4 + $0x19c] sm:$0xf]  ;;  %v4391_v0 = vld [vmem:[#allocation4 + $0x1a4] sm:$0xf0] }
 0x126   :  { %2755 = vmatpush.bf16.msra.mxu1 %v4306_v59  ;;  %v4235_v59 = vld [vmem:[#allocation4 + $0x6c] sm:$0xf0] }
 0x127   :  { %2769 = vmatpush.bf16.msra.mxu2 %v4402_v12  ;;  %v4238_v17 = vor.u32 %v4931_v1, %v4235_v59  ;;  %v4214_v12 = vor.u32 %v4925_v44, %v4211_v43  ;;  %v4939_v1 = vld [vmem:[#allocation4 + $0xa0] sm:$0xf0]  ;;  %v4361_v59 = vld [vmem:[#allocation4 + $0x158] sm:$0xf]  ;;  %v5010_v43 = vld [vmem:[#allocation4 + $0x2d8] sm:$0xf0] }
 0x129   :  { %2742 = vmatpush.bf16.msra.mxu0 %v4198_v61  ;;  %v4982_v61 = vld [vmem:[#allocation4 + $0x1fc] sm:$0xf] }
 0x12a   :  { %2756 = vmatpush.bf16.msra.mxu1 %v4294_v4  ;;  %v4442_v30 = vor.u32 %v4982_v61, %v4439_v10  ;;  %v4226_v4 = vor.u32 %v4928_v8, %v4223_v39  ;;  %v4967_v8 = vld [vmem:[#allocation4 + $0x184] sm:$0xf]  ;;  %v4362_v61 = vor.u32 %v4963_v60, %v4361_v59  ;;  %v4349_v10 = vld [vmem:[#allocation4 + $0x140] sm:$0xf] }
 0x12b   :  { %2770 = vmatpush.bf16.msra.mxu2 %v4390_v18  ;;  %v4973_v18 = vld [vmem:[#allocation4 + $0x1b4] sm:$0xf] }
 0x12d   :  { %2743 = vmatpush.bf16.msra.mxu0 %v4186_v40  ;;  %v1861_v40 = vpop.f32.mrf.mxu0 }
 0x12e   :  { %2757 = vmatpush.bf16.msra.mxu1 %v4282_v22  ;;  %v4418_v22 = vor.u32 %v4976_v16, %v4415_v19  ;;  %v1862_v52 = vadd.f32 %v1861_v40, %v342_v24  ;;  %v4957_v16 = vld [vmem:[#allocation4 + $0x130] sm:$0xf0]  ;;  %v4533_v19 = vld [vmem:[#allocation4 + $0x2b8] sm:$0xf]  ;;  %v5007_v40 = vld [vmem:[#allocation4 + $0x2c0] sm:$0xf0] }
 0x12f   :  { %2771 = vmatpush.bf16.msra.mxu2 %v4378_v46 }
 0x130   :  { %2744 = vmatmul.bf16.vlgmr.msra.gmra.mxu0 %v5301_v38 }
 0x131   :  { %2792 = vmatpush.bf16.msrb.mxu0 %v4274_v23  ;;  %2758 = vmatmul.bf16.vlgmr.msra.gmra.mxu1 %v5303_v41  ;;  %v1875_v23 = vpop.f32.mrf.mxu1 }
 0x132   :  { %2806 = vmatpush.bf16.msrb.mxu1 %v4370_v25  ;;  %v4187_v25 = vld [vmem:[#allocation4 + $0xc] sm:$0xf0]  ;;  %v1876_v39 = vadd.f32 %v1875_v23, %v1862_v52  ;;  %v4534_v23 = vor.u32 %v5007_v40, %v4533_v19  ;;  %v4473_v19 = vld [vmem:[#allocation4 + $0x240] sm:$0xf]  ;;  %v4992_v40 = vld [vmem:[#allocation4 + $0x248] sm:$0xf0] }
 0x133   :  { %2820 = vmatpush.bf16.msrb.mxu2 %v4466_v54  ;;  %v4190_v48 = vor.u32 %v4919_v32, %v4187_v25  ;;  %v4229_v25 = vld [vmem:[#allocation4 + $0x50] sm:$0xf] }
 0x135   :  { %2793 = vmatpush.bf16.msrb.mxu0 %v4262_v3  ;;  %v4406_v3 = vor.u32 %v4973_v18, %v4403_v29  ;;  %v1889_v46 = vpop.f32.mrf.mxu2  ;;  %v1863_v33 = vpop.f32.mrf.mxu0  ;;  %v4954_v29 = vld [vmem:[#allocation4 + $0x118] sm:$0xf0] }
 0x136   :  { %2807 = vmatpush.bf16.msrb.mxu1 %v4358_v28  ;;  %v4286_v28 = vor.u32 %v4943_v27, %v4283_v31  ;;  %v1903_v54 = vpop.f32.mrf.mxu3  ;;  %v1864_v57 = vadd.f32 %v1863_v33, %v342_v24  ;;  %v1890_v11 = vadd.f32 %v1889_v46, %v1876_v39  ;;  %v4325_v27 = vld [vmem:[#allocation4 + $0x110] sm:$0xf]  ;;  %v4521_v31 = vld [vmem:[#allocation4 + $0x2a0] sm:$0xf]  ;;  %v4313_v46 = vld [vmem:[#allocation4 + $0xf8] sm:$0xf] }
 0x137   :  { %2821 = vmatpush.bf16.msrb.mxu2 %v4454_v58  ;;  %v4522_v45 = vor.u32 %v5004_v34, %v4521_v31  ;;  %v4301_v33 = vld [vmem:[#allocation4 + $0xe0] sm:$0xf]  ;;  %v5009_v34 = vld [vmem:[#allocation4 + $0x2d4] sm:$0xf] }
 0x138   :  { %v1904_v24 = vadd.f32 %v1903_v54, %v1890_v11  ;;  %v4205_v54 = vld [vmem:[#allocation4 + $0x20] sm:$0xf] }
 0x139   :  { %2794 = vmatpush.bf16.msrb.mxu0 %v4250_v55  ;;  %v4265_v55 = vld [vmem:[#allocation4 + $0x98] sm:$0xf]  ;;  %v1877_v58 = vpop.f32.mrf.mxu1 }
 0x13a   :  { %2808 = vmatpush.bf16.msrb.mxu1 %v4346_v9  ;;  %v4394_v9 = vor.u32 %v4970_v51, %v4391_v0  ;;  %v4266_v56 = vor.u32 %v4939_v1, %v4265_v55  ;;  %v1878_v20 = vadd.f32 %v1877_v58, %v1864_v57  ;;  %v4951_v51 = vld [vmem:[#allocation4 + $0x100] sm:$0xf0]  ;;  %v4924_v55 = vld [vmem:[#allocation4 + $0x28] sm:$0xf0]  ;;  %v4485_v57 = vld [vmem:[#allocation4 + $0x258] sm:$0xf] }
 0x13b   :  { %2822 = vmatpush.bf16.msrb.mxu2 %v4442_v30  ;;  %v5013_v30 = vld [vmem:[#allocation4 + $0x2f0] sm:$0xf0]  ;;  %v4314_v60 = vor.u32 %v4951_v51, %v4313_v46  ;;  %v4948_v58 = vld [vmem:[#allocation4 + $0xe8] sm:$0xf0]  ;;  %v4433_v46 = vld [vmem:[#allocation4 + $0x1e8] sm:$0xf] }
 0x13c   :  { %v4558_v44 = vor.u32 %v5013_v30, %v4557_v37  ;;  %v4302_v30 = vor.u32 %v4948_v58, %v4301_v33  ;;  %v4981_v51 = vld [vmem:[#allocation4 + $0x1f0] sm:$0xf0]  ;;  %v4409_v33 = vld [vmem:[#allocation4 + $0x1b8] sm:$0xf] }
 0x13d   :  { %2795 = vmatpush.bf16.msrb.mxu0 %v4238_v17  ;;  %v4936_v17 = vld [vmem:[#allocation4 + $0x88] sm:$0xf0]  ;;  %v1891_v15 = vpop.f32.mrf.mxu2 }
 0x13e   :  { %2809 = vmatpush.bf16.msrb.mxu1 %v4334_v63  ;;  %v4379_v63 = vld [vmem:[#allocation4 + $0x18c] sm:$0xf0]  ;;  %v4254_v6 = vor.u32 %v4936_v17, %v4253_v49  ;;  %2778 = vmatpush.bf16.msra.mxu3 %v4558_v44  ;;  %v1905_v21 = vpop.f32.mrf.mxu3  ;;  %v1892_v35 = vadd.f32 %v1891_v15, %v1878_v20  ;;  %v4509_v49 = vld [vmem:[#allocation4 + $0x288] sm:$0xf]  ;;  %v4921_v44 = vld [vmem:[#allocation4 + $0x10] sm:$0xf0] }
 0x13f   :  { %2823 = vmatpush.bf16.msrb.mxu2 %v4430_v14  ;;  %v4382_v2 = vor.u32 %v4967_v8, %v4379_v63  ;;  %v4497_v8 = vld [vmem:[#allocation4 + $0x270] sm:$0xf]  ;;  %v4998_v63 = vld [vmem:[#allocation4 + $0x278] sm:$0xf0] }
 0x140   :  { %v1906_v0 = vadd.f32 %v1905_v21, %v1892_v35  ;;  %v4469_v21 = vld [vmem:[#allocation4 + $0x230] sm:$0xf]  ;;  %v4547_v35 = vld [vmem:[#allocation4 + $0x2dc] sm:$0xf0] }
 0x141   :  { %2796 = vmatpush.bf16.msrb.mxu0 %v4226_v4  ;;  %v4960_v4 = vld [vmem:[#allocation4 + $0x148] sm:$0xf0] }
 0x142   :  { %2810 = vmatpush.bf16.msrb.mxu1 %v4322_v5  ;;  %v4545_v5 = vld [vmem:[#allocation4 + $0x2d0] sm:$0xf]  ;;  %v4350_v14 = vor.u32 %v4960_v4, %v4349_v10  ;;  %v4206_v10 = vor.u32 %v4924_v55, %v4205_v54  ;;  %v4193_v4 = vld [vmem:[#allocation4 + $0x8] sm:$0xf]  ;;  %v4978_v55 = vld [vmem:[#allocation4 + $0x1d8] sm:$0xf0] }
 0x143   :  { %2824 = vmatpush.bf16.msrb.mxu2 %v4418_v22  ;;  %v4546_v7 = vor.u32 %v5010_v43, %v4545_v5  ;;  %v4289_v5 = vld [vmem:[#allocation4 + $0xc8] sm:$0xf]  ;;  %v4945_v43 = vld [vmem:[#allocation4 + $0xd0] sm:$0xf0]  ;;  %v4421_v54 = vld [vmem:[#allocation4 + $0x1d0] sm:$0xf] }
 0x145   :  { %2797 = vmatpush.bf16.msrb.mxu0 %v4214_v12  ;;  %v4241_v12 = vld [vmem:[#allocation4 + $0x68] sm:$0xf]  ;;  %2779 = vmatpush.bf16.msra.mxu3 %v4546_v7 }
 0x146   :  { %2811 = vmatpush.bf16.msrb.mxu1 %v4310_v13  ;;  %v4337_v13 = vld [vmem:[#allocation4 + $0x128] sm:$0xf]  ;;  %v4242_v22 = vor.u32 %v4933_v47, %v4241_v12 }
 0x147   :  { %2825 = vmatpush.bf16.msrb.mxu2 %v4406_v3  ;;  %v4338_v32 = vor.u32 %v4957_v16, %v4337_v13  ;;  %v4290_v16 = vor.u32 %v4945_v43, %v4289_v5  ;;  %v4969_v5 = vld [vmem:[#allocation4 + $0x190] sm:$0xf0] }
 0x149   :  { %2798 = vmatpush.bf16.msrb.mxu0 %v4202_v62  ;;  %2780 = vmatpush.bf16.msra.mxu3 %v4534_v23  ;;  %v4474_v23 = vor.u32 %v4992_v40, %v4473_v19 }
 0x14a   :  { %2812 = vmatpush.bf16.msrb.mxu1 %v4298_v26  ;;  %v4930_v26 = vld [vmem:[#allocation4 + $0x58] sm:$0xf0] }
 0x14b   :  { %2826 = vmatpush.bf16.msrb.mxu2 %v4394_v9  ;;  %v4230_v3 = vor.u32 %v4930_v26, %v4229_v25  ;;  %v5012_v25 = vld [vmem:[#allocation4 + $0x2ec] sm:$0xf]  ;;  %v4559_v26 = vld [vmem:[#allocation4 + $0x2f4] sm:$0xf0] }
 0x14c   :  { %v4562_v31 = vor.u32 %v5012_v25, %v4559_v26 }
 0x14d   :  { %2799 = vmatpush.bf16.msrb.mxu0 %v4190_v48  ;;  %v1917_v62 = vpop.f32.mrf.mxu0  ;;  %v4326_v48 = vor.u32 %v4954_v29, %v4325_v27  ;;  %2781 = vmatpush.bf16.msra.mxu3 %v4522_v45  ;;  %v4987_v29 = vld [vmem:[#allocation4 + $0x220] sm:$0xf0]  ;;  %v4550_v45 = vor.u32 %v5009_v34, %v4547_v35 }
 0x14e   :  { %2813 = vmatpush.bf16.msrb.mxu1 %v4286_v28  ;;  %v1931_v18 = vpop.f32.mrf.mxu1  ;;  %v1918_v42 = vadd.f32 %v1917_v62, %v1904_v24  ;;  %v4217_v28 = vld [vmem:[#allocation4 + $0x38] sm:$0xf] }
 0x14f   :  { %2827 = vmatpush.bf16.msrb.mxu2 %v4382_v2  ;;  %v4498_v2 = vor.u32 %v4998_v63, %v4497_v8  ;;  %v4997_v8 = vld [vmem:[#allocation4 + $0x274] sm:$0xf]  ;;  %v4499_v63 = vld [vmem:[#allocation4 + $0x27c] sm:$0xf0] }
 0x150   :  { %2800 = vmatmul.bf16.vlgmr.msrb.gmra.mxu0 %v5301_v38  ;;  %v1932_v1 = vadd.f32 %v1931_v18, %v1918_v42  ;;  %v4457_v18 = vld [vmem:[#allocation4 + $0x218] sm:$0xf]  ;;  %v4445_v42 = vld [vmem:[#allocation4 + $0x200] sm:$0xf] }
 0x151   :  { %2848 = vmatpush.bf16.msra.mxu0 %v4278_v50  ;;  %2814 = vmatmul.bf16.vlgmr.msrb.gmra.mxu1 %v5303_v41  ;;  %v4927_v50 = vld [vmem:[#allocation4 + $0x40] sm:$0xf0] }
 0x152   :  { %2862 = vmatpush.bf16.msra.mxu1 %v4374_v53  ;;  %v4218_v53 = vor.u32 %v4927_v50, %v4217_v28  ;;  %v4535_v50 = vld [vmem:[#allocation4 + $0x2c4] sm:$0xf0] }
 0x155   :  { %2849 = vmatpush.bf16.msra.mxu0 %v4266_v56  ;;  %v1945_v52 = vpop.f32.mrf.mxu2  ;;  %v1919_v9 = vpop.f32.mrf.mxu0  ;;  %v5001_v56 = vld [vmem:[#allocation4 + $0x290] sm:$0xf0] }
 0x156   :  { %2863 = vmatpush.bf16.msra.mxu1 %v4362_v61  ;;  %v1959_v59 = vpop.f32.mrf.mxu3  ;;  %v4510_v17 = vor.u32 %v5001_v56, %v4509_v49  ;;  %v1920_v39 = vadd.f32 %v1919_v9, %v1906_v0  ;;  %v1933_v61 = vpop.f32.mrf.mxu1  ;;  %v1946_v37 = vadd.f32 %v1945_v52, %v1932_v1  ;;  %v5003_v52 = vld [vmem:[#allocation4 + $0x2a4] sm:$0xf]  ;;  %v4422_v9 = vor.u32 %v4978_v55, %v4421_v54  ;;  %v4553_v54 = vld [vmem:[#allocation4 + $0x2d8] sm:$0xf] }
 0x157   :  { %v4975_v49 = vld [vmem:[#allocation4 + $0x1c0] sm:$0xf0] }
 0x158   :  { %2782 = vmatpush.bf16.msra.mxu3 %v4510_v17  ;;  %v1934_v7 = vadd.f32 %v1933_v61, %v1920_v39  ;;  %v1960_v47 = vadd.f32 %v1959_v59, %v1946_v37  ;;  %v5000_v59 = vld [vmem:[#allocation4 + $0x28c] sm:$0xf]  ;;  %v4410_v17 = vor.u32 %v4975_v49, %v4409_v33  ;;  %v4397_v39 = vld [vmem:[#allocation4 + $0x1a0] sm:$0xf]  ;;  %v5011_v55 = vld [vmem:[#allocation4 + $0x2e0] sm:$0xf0] }
 0x159   :  { %2850 = vmatpush.bf16.msra.mxu0 %v4254_v6  ;;  %v4995_v6 = vld [vmem:[#allocation4 + $0x260] sm:$0xf0]  ;;  %v4972_v61 = vld [vmem:[#allocation4 + $0x1a8] sm:$0xf0]  ;;  %v4529_v33 = vld [vmem:[#allocation4 + $0x2a8] sm:$0xf] }
 0x15a   :  { %2864 = vmatpush.bf16.msra.mxu1 %v4350_v14  ;;  %v4194_v14 = vor.u32 %v4921_v44, %v4193_v4  ;;  %v4486_v12 = vor.u32 %v4995_v6, %v4485_v57  ;;  %v2078_v24 = vmax.f32 %v1960_v47, 0.0  ;;  %v4398_v37 = vor.u32 %v4972_v61, %v4397_v39  ;;  %v4487_v4 = vld [vmem:[#allocation4 + $0x264] sm:$0xf0]  ;;  %v5005_v49 = vld [vmem:[#allocation4 + $0x2b0] sm:$0xf0] }
 0x15b   :  { %v4385_v44 = vld [vmem:[#allocation4 + $0x188] sm:$0xf]  ;;  %v343_v57 = vperm.slane %v5273_v36, 3  ;;  %v4999_v39 = vld [vmem:[#allocation4 + $0x280] sm:$0xf0] }
 0x15c   :  { %2783 = vmatpush.bf16.msra.mxu3 %v4498_v2 }
 0x15d   :  { %2851 = vmatpush.bf16.msra.mxu0 %v4242_v22  ;;  %v1947_v11 = vpop.f32.mrf.mxu2  ;;  %v4990_v22 = vld [vmem:[#allocation4 + $0x238] sm:$0xf0] }
 0x15e   :  { %2865 = vmatpush.bf16.msra.mxu1 %v4338_v32  ;;  %v1948_v13 = vadd.f32 %v1947_v11, %v1934_v7  ;;  %v1961_v15 = vpop.f32.mrf.mxu3  ;;  %v4470_v32 = vor.u32 %v4990_v22, %v4469_v21  ;;  %v4386_v11 = vor.u32 %v4969_v5, %v4385_v44  ;;  %v5022_v5 = vld [vmem:[%s5407_s5 + $0x38] sm:$0xff] }
 0x160   :  { %v1962_v20 = vadd.f32 %v1961_v15, %v1948_v13  ;;  %2784 = vmatpush.bf16.msra.mxu3 %v4486_v12  ;;  %v4475_v12 = vld [vmem:[#allocation4 + $0x24c] sm:$0xf0] }
 0x161   :  { %2852 = vmatpush.bf16.msra.mxu0 %v4230_v3  ;;  %v4458_v3 = vor.u32 %v4987_v29, %v4457_v18 }
 0x162   :  { %2866 = vmatpush.bf16.msra.mxu1 %v4326_v48  ;;  %v2082_v62 = vmax.f32 %v1962_v20, 0.0  ;;  %v4984_v48 = vld [vmem:[#allocation4 + $0x208] sm:$0xf0] }
 0x163   :  { %v4446_v28 = vor.u32 %v4984_v48, %v4445_v42 }
 0x164   :  { %v5310_v27 = vpack.c.bf16 %v2082_v62, %v2078_v24  ;;  %2785 = vmatpush.bf16.msra.mxu3 %v4474_v23 }
 0x165   :  { %2853 = vmatpush.bf16.msra.mxu0 %v4218_v53  ;;  %v4523_v53 = vld [vmem:[#allocation4 + $0x2ac] sm:$0xf0] }
 0x166   :  { %2867 = vmatpush.bf16.msra.mxu1 %v4314_v60  ;;  %2772 = vmatmul.bf16.vlgmr.msra.gmra.mxu2 %v5310_v27  ;;  %v4526_v1 = vor.u32 %v5003_v52, %v4523_v53  ;;  %v4511_v60 = vld [vmem:[#allocation4 + $0x294] sm:$0xf0] }
 0x167   :  { %2876 = vmatpush.bf16.msra.mxu2 %v4470_v32  ;;  %v4514_v56 = vor.u32 %v5000_v59, %v4511_v60  ;;  %v5008_v59 = vld [vmem:[#allocation4 + $0x2c8] sm:$0xf0] }
 0x168   :  { %2834 = vmatpush.bf16.msrb.mxu3 %v4562_v31 }
 0x169   :  { %2854 = vmatpush.bf16.msra.mxu0 %v4206_v10  ;;  %v4502_v10 = vor.u32 %v4997_v8, %v4499_v63  ;;  %v4505_v63 = vld [vmem:[#allocation4 + $0x278] sm:$0xf] }
 0x16a   :  { %2868 = vmatpush.bf16.msra.mxu1 %v4302_v30  ;;  %v4994_v30 = vld [vmem:[#allocation4 + $0x25c] sm:$0xf]  ;;  %v4506_v61 = vor.u32 %v4999_v39, %v4505_v63 }
 0x16b   :  { %2877 = vmatpush.bf16.msra.mxu2 %v4458_v3  ;;  %v4490_v43 = vor.u32 %v4994_v30, %v4487_v4  ;;  %v4481_v30 = vld [vmem:[#allocation4 + $0x248] sm:$0xf]  ;;  %v4993_v4 = vld [vmem:[#allocation4 + $0x250] sm:$0xf0] }
 0x16c   :  { %2835 = vmatpush.bf16.msrb.mxu3 %v4550_v45  ;;  %v4482_v44 = vor.u32 %v4993_v4, %v4481_v30 }
 0x16d   :  { %2855 = vmatpush.bf16.msra.mxu0 %v4194_v14  ;;  %v1973_v58 = vpop.f32.mrf.mxu0  ;;  %v4991_v14 = vld [vmem:[#allocation4 + $0x244] sm:$0xf] }
 0x16e   :  { %2869 = vmatpush.bf16.msra.mxu1 %v4290_v16  ;;  %v1987_v2 = vpop.f32.mrf.mxu1  ;;  %v4478_v47 = vor.u32 %v4991_v14, %v4475_v12  ;;  %v1974_v13 = vadd.f32 %v1973_v58, %v343_v57  ;;  %v4517_v58 = vld [vmem:[#allocation4 + $0x290] sm:$0xf] }
 0x16f   :  { %2878 = vmatpush.bf16.msra.mxu2 %v4446_v28  ;;  %v5017_v14 = vld [vmem:[%s5407_s5 + $0x10] sm:$0xff] }
 0x170   :  { %2856 = vmatmul.bf16.vlgmr.msra.gmra.mxu0 %v5301_v38  ;;  %v5006_v38 = vld [vmem:[#allocation4 + $0x2bc] sm:$0xf]  ;;  %v1988_v19 = vadd.f32 %v1987_v2, %v1974_v13  ;;  %v4996_v2 = vld [vmem:[#allocation4 + $0x268] sm:$0xf0]  ;;  %v5029_v12 = vld [vmem:[%s5407_s5 + $0x70] sm:$0xff] }
 0x171   :  { %2870 = vmatmul.bf16.vlgmr.msra.gmra.mxu1 %v5303_v41  ;;  %v4538_v0 = vor.u32 %v5006_v38, %v4535_v50  ;;  %v4434_v41 = vor.u32 %v4981_v51, %v4433_v46  ;;  %v4565_v46 = vld [vmem:[#allocation4 + $0x2f0] sm:$0xf]  ;;  %v5014_v51 = vld [vmem:[#allocation4 + $0x2f8] sm:$0xf0]  ;;  %3109 = vmatpush.bf16.msrb.mxu0 %v5022_v5  ;;  %v5028_v13 = vld [vmem:[%s5407_s5 + $0x68] sm:$0xff] }
 0x172   :  { %v4566_v52 = vor.u32 %v5014_v51, %v4565_v46 }
 0x173   :  { %2836 = vmatpush.bf16.msrb.mxu3 %v4538_v0  ;;  %2879 = vmatpush.bf16.msra.mxu2 %v4434_v41 }
 0x175   :  { %v2001_v6 = vpop.f32.mrf.mxu2  ;;  %v1975_v15 = vpop.f32.mrf.mxu0 }
 0x176   :  { %2828 = vmatmul.bf16.vlgmr.msrb.gmra.mxu2 %v5310_v27  ;;  %v2015_v7 = vpop.f32.mrf.mxu3  ;;  %v1989_v16 = vpop.f32.mrf.mxu1  ;;  %v1976_v40 = vadd.f32 %v1975_v15, %v343_v57  ;;  %v2002_v21 = vadd.f32 %v2001_v6, %v1988_v19  ;;  %v5020_v57 = vld [vmem:[%s5407_s5 + $0x28] sm:$0xff]  ;;  %v5019_v6 = vld [vmem:[%s5407_s5 + $0x20] sm:$0xff]  ;;  %v5026_v19 = vld [vmem:[%s5407_s5 + $0x58] sm:$0xff] }
 0x177   :  { %2837 = vmatpush.bf16.msrb.mxu3 %v4526_v1  ;;  %2880 = vmatpush.bf16.msra.mxu2 %v4422_v9  ;;  %v4554_v1 = vor.u32 %v5011_v55, %v4553_v54  ;;  %v4541_v9 = vld [vmem:[#allocation4 + $0x2c0] sm:$0xf] }
 0x178   :  { %v1990_v36 = vadd.f32 %v1989_v16, %v1976_v40  ;;  %v2016_v62 = vadd.f32 %v2015_v7, %v2002_v21  ;;  %v4542_v60 = vor.u32 %v5008_v59, %v4541_v9  ;;  %v5018_v7 = vld [vmem:[%s5407_s5 + $0x18] sm:$0xff]  ;;  %v5015_v15 = vld [vmem:[%s5407_s5] sm:$0xff] }
 0x179   :  { %v5027_v16 = vld [vmem:[%s5407_s5 + $0x60] sm:$0xff]  ;;  %v5038_v40 = vld [vmem:[%s5407_s5 + $0xb8] sm:$0xff] }
 0x17a   :  { %v5031_v59 = vld [vmem:[%s5407_s5 + $0x80] sm:$0xff] }
 0x17b   :  { %2838 = vmatpush.bf16.msrb.mxu3 %v4514_v56  ;;  %2881 = vmatpush.bf16.msra.mxu2 %v4410_v17  ;;  %v4530_v56 = vor.u32 %v5005_v49, %v4529_v33  ;;  %v5002_v17 = vld [vmem:[#allocation4 + $0x298] sm:$0xf0] }
 0x17c   :  { %v4518_v8 = vor.u32 %v5002_v17, %v4517_v58 }
 0x17d   :  { %v2003_v20 = vpop.f32.mrf.mxu2 }
 0x17e   :  { %v2017_v22 = vpop.f32.mrf.mxu3  ;;  %v2004_v32 = vadd.f32 %v2003_v20, %v1990_v36  ;;  %v5025_v36 = vld [vmem:[%s5407_s5 + $0x50] sm:$0xff] }
 0x17f   :  { %2839 = vmatpush.bf16.msrb.mxu3 %v4502_v10  ;;  %2882 = vmatpush.bf16.msra.mxu2 %v4398_v37  ;;  %v4493_v10 = vld [vmem:[#allocation4 + $0x260] sm:$0xf] }
 0x180   :  { %v2018_v18 = vadd.f32 %v2017_v22, %v2004_v32  ;;  %v4494_v37 = vor.u32 %v4996_v2, %v4493_v10  ;;  %v5037_v22 = vld [vmem:[%s5407_s5 + $0xb0] sm:$0xff]  ;;  %v2216_v32 = vld [vmem:[%s5406_s4] sm:$0x7] }
 0x181   :  { %v2219_v55 = vperm.slane %v2216_v32, 1 }
 0x183   :  { %2840 = vmatpush.bf16.msrb.mxu3 %v4490_v43  ;;  %2883 = vmatpush.bf16.msra.mxu2 %v4386_v11  ;;  %v5021_v43 = vld [vmem:[%s5407_s5 + $0x30] sm:$0xff]  ;;  %v5030_v11 = vld [vmem:[%s5407_s5 + $0x78] sm:$0xff] }
 0x184   :  { %3110 = vmatpush.bf16.msrb.mxu0 %v5021_v43  ;;  %3123 = vmatpush.bf16.msrb.mxu1 %v5030_v11  ;;  %v2220_v43 = vperm.slane %v2216_v32, 2 }
 0x186   :  { %2884 = vmatmul.bf16.vlgmr.msra.gmra.mxu2 %v5310_v27 }
 0x187   :  { %2841 = vmatpush.bf16.msrb.mxu3 %v4478_v47  ;;  %v5016_v47 = vld [vmem:[%s5407_s5 + $0x8] sm:$0xff]  ;;  %3137 = vmatpush.bf16.msrb.mxu2 %v5038_v40 }
 0x188   :  { %3111 = vmatpush.bf16.msrb.mxu0 %v5020_v57  ;;  %3124 = vmatpush.bf16.msrb.mxu1 %v5029_v12 }
 0x18b   :  { %3138 = vmatpush.bf16.msrb.mxu2 %v5037_v22 }
 0x18c   :  { %3112 = vmatpush.bf16.msrb.mxu0 %v5019_v6  ;;  %3125 = vmatpush.bf16.msrb.mxu1 %v5028_v13 }
 0x18d   :  { %v2029_v23 = vpop.f32.mrf.mxu0 }
 0x18e   :  { %v2043_v24 = vpop.f32.mrf.mxu1  ;;  %v2030_v25 = vadd.f32 %v2029_v23, %v2016_v62  ;;  %v5036_v62 = vld [vmem:[%s5407_s5 + $0xa8] sm:$0xff] }
 0x18f   :  { %3139 = vmatpush.bf16.msrb.mxu2 %v5036_v62 }
 0x190   :  { %v2044_v34 = vadd.f32 %v2043_v24, %v2030_v25  ;;  %3113 = vmatpush.bf16.msrb.mxu0 %v5018_v7  ;;  %3126 = vmatpush.bf16.msrb.mxu1 %v5027_v16  ;;  %v5024_v24 = vld [vmem:[%s5407_s5 + $0x48] sm:$0xff] }
 0x194   :  { %3114 = vmatpush.bf16.msrb.mxu0 %v5017_v14  ;;  %3127 = vmatpush.bf16.msrb.mxu1 %v5026_v19 }
 0x195   :  { %v2057_v26 = vpop.f32.mrf.mxu2  ;;  %v2031_v31 = vpop.f32.mrf.mxu0 }
 0x196   :  { %v2071_v29 = vpop.f32.mrf.mxu3  ;;  %v2032_v35 = vadd.f32 %v2031_v31, %v2018_v18  ;;  %v2058_v3 = vadd.f32 %v2057_v26, %v2044_v34  ;;  %v2045_v45 = vpop.f32.mrf.mxu1  ;;  %v2218_v26 = vperm.slane %v2216_v32, 0  ;;  %v5023_v18 = vld [vmem:[%s5407_s5 + $0x40] sm:$0xff] }
 0x198   :  { %v2046_v42 = vadd.f32 %v2045_v45, %v2032_v35  ;;  %v2072_v27 = vadd.f32 %v2071_v29, %v2058_v3  ;;  %3115 = vmatpush.bf16.msrb.mxu0 %v5016_v47  ;;  %3128 = vmatpush.bf16.msrb.mxu1 %v5025_v36  ;;  %v5035_v29 = vld [vmem:[%s5407_s5 + $0xa0] sm:$0xff]  ;;  %v5034_v35 = vld [vmem:[%s5407_s5 + $0x98] sm:$0xff] }
 0x199   :  { %3140 = vmatpush.bf16.msrb.mxu2 %v5035_v29 }
 0x19a   :  { %v2079_v0 = vmax.f32 %v2072_v27, 0.0 }
 0x19c   :  { %3116 = vmatpush.bf16.msrb.mxu0 %v5015_v15  ;;  %3129 = vmatpush.bf16.msrb.mxu1 %v5024_v24 }
 0x19d   :  { %v2059_v48 = vpop.f32.mrf.mxu2  ;;  %3141 = vmatpush.bf16.msrb.mxu2 %v5034_v35 }
 0x19e   :  { %v2060_v28 = vadd.f32 %v2059_v48, %v2046_v42  ;;  %v2073_v38 = vpop.f32.mrf.mxu3 }
 0x1a0   :  { %v2074_v50 = vadd.f32 %v2073_v38, %v2060_v28  ;;  %3130 = vmatpush.bf16.msrb.mxu1 %v5023_v18  ;;  %v5033_v28 = vld [vmem:[%s5407_s5 + $0x90] sm:$0xff] }
 0x1a1   :  { %3142 = vmatpush.bf16.msrb.mxu2 %v5033_v28 }
 0x1a2   :  { %v2083_v41 = vmax.f32 %v2074_v50, 0.0 }
 0x1a4   :  { %v2087_v53 = vpack.c.bf16 %v2083_v41, %v2079_v0  ;;  %v5032_v41 = vld [vmem:[%s5407_s5 + $0x88] sm:$0xff] }
 0x1a5   :  { %3143 = vmatpush.bf16.msrb.mxu2 %v5032_v41 }
 0x1a6   :  { %2786 = vmatmul.bf16.vlgmr.msra.gmra.mxu3 %v2087_v53 }
 0x1a7   :  { %2890 = vmatpush.bf16.msra.mxu3 %v4566_v52 }
 0x1a9   :  { %3144 = vmatpush.bf16.msrb.mxu2 %v5031_v59 }
 0x1ab   :  { %2891 = vmatpush.bf16.msra.mxu3 %v4554_v1 }
 0x1ad   :  { %v2745_v20 = vpop.f32.mrf.mxu0 }
 0x1ae   :  { %v2759_v23 = vpop.f32.mrf.mxu1  ;;  %v2746_v34 = vadd.f32 %v2745_v20, %v2218_v26 }
 0x1af   :  { %2892 = vmatpush.bf16.msra.mxu3 %v4542_v60 }
 0x1b0   :  { %v2760_v27 = vadd.f32 %v2759_v23, %v2746_v34 }
 0x1b3   :  { %2893 = vmatpush.bf16.msra.mxu3 %v4530_v56 }
 0x1b5   :  { %v2747_v25 = vpop.f32.mrf.mxu0 }
 0x1b6   :  { %2842 = vmatmul.bf16.vlgmr.msrb.gmra.mxu3 %v2087_v53  ;;  %v2761_v3 = vpop.f32.mrf.mxu1  ;;  %v2748_v42 = vadd.f32 %v2747_v25, %v2218_v26  ;;  %v5045_v25 = vld [vmem:[%s5408_s6] ss:$0 sm:$0xff] }
 0x1b7   :  { %2894 = vmatpush.bf16.msra.mxu3 %v4518_v8 }
 0x1b8   :  { %v2762_v38 = vadd.f32 %v2761_v3, %v2748_v42 }
 0x1bb   :  { %2895 = vmatpush.bf16.msra.mxu3 %v4506_v61 }
 0x1bf   :  { %2896 = vmatpush.bf16.msra.mxu3 %v4494_v37 }
 0x1c3   :  { %2897 = vmatpush.bf16.msra.mxu3 %v4482_v44 }
 0x1c6   :  { %2898 = vmatmul.bf16.vlgmr.msra.gmra.mxu3 %v2087_v53 }
 0x1cd   :  { %v2801_v48 = vpop.f32.mrf.mxu0 }
 0x1ce   :  { %v2815_v52 = vpop.f32.mrf.mxu1  ;;  %v2802_v49 = vadd.f32 %v2801_v48, %v2219_v55 }
 0x1d0   :  { %v2816_v63 = vadd.f32 %v2815_v52, %v2802_v49 }
 0x1d5   :  { %v2803_v60 = vpop.f32.mrf.mxu0 }
 0x1d6   :  { %v2804_v17 = vadd.f32 %v2803_v60, %v2219_v55  ;;  %v2817_v8 = vpop.f32.mrf.mxu1 }
 0x1d8   :  { %v2818_v61 = vadd.f32 %v2817_v8, %v2804_v17 }
 0x1e9   :  { %v2773_v21 = vpop.f32.mrf.mxu2 }
 0x1ea   :  { %v2774_v50 = vadd.f32 %v2773_v21, %v2760_v27 }
 0x1ed   :  { %v2857_v39 = vpop.f32.mrf.mxu0 }
 0x1ee   :  { %v2871_v44 = vpop.f32.mrf.mxu1  ;;  %v2858_v14 = vadd.f32 %v2857_v39, %v2220_v43 }
 0x1f0   :  { %v2872_v13 = vadd.f32 %v2871_v44, %v2858_v14 }
 0x1f1   :  { %v2775_v31 = vpop.f32.mrf.mxu2 }
 0x1f2   :  { %v2776_v51 = vadd.f32 %v2775_v31, %v2762_v38 }
 0x1f5   :  { %v2859_v11 = vpop.f32.mrf.mxu0 }
 0x1f6   :  { %v2860_v47 = vadd.f32 %v2859_v11, %v2220_v43  ;;  %v2873_v15 = vpop.f32.mrf.mxu1 }
 0x1f8   :  { %v2874_v19 = vadd.f32 %v2873_v15, %v2860_v47 }
 0x1f9   :  { %v2829_v46 = vpop.f32.mrf.mxu2 }
 0x1fa   :  { %v2830_v10 = vadd.f32 %v2829_v46, %v2816_v63 }
 0x201   :  { %v2831_v56 = vpop.f32.mrf.mxu2 }
 0x202   :  { %v2832_v2 = vadd.f32 %v2831_v56, %v2818_v61 }
 0x209   :  { %v2885_v5 = vpop.f32.mrf.mxu2 }
 0x20a   :  { %v2886_v40 = vadd.f32 %v2885_v5, %v2872_v13 }
 0x211   :  { %v2887_v16 = vpop.f32.mrf.mxu2 }
 0x212   :  { %v2888_v20 = vadd.f32 %v2887_v16, %v2874_v19 }
 0x229   :  { %v2787_v45 = vpop.f32.mrf.mxu3 }
 0x22a   :  { %v2788_v0 = vadd.f32 %v2787_v45, %v2774_v50 }
 0x22c   :  { %v2904_v1 = vmax.f32 %v2788_v0, 0.0 }
 0x231   :  { %v2789_v53 = vpop.f32.mrf.mxu3 }
 0x232   :  { %v2790_v54 = vadd.f32 %v2789_v53, %v2776_v51 }
 0x234   :  { %v2907_v9 = vmax.f32 %v2790_v54, 0.0 }
 0x236   :  { %v2910_v33 = vpack.c.bf16 %v2907_v9, %v2904_v1 }
 0x238   :  { %3117 = vmatmul.bf16.vlgmr.msrb.gmra.mxu0 %v2910_v33 }
 0x239   :  { %v2843_v58 = vpop.f32.mrf.mxu3 }
 0x23a   :  { %v2844_v37 = vadd.f32 %v2843_v58, %v2830_v10 }
 0x23c   :  { %v2905_v57 = vmax.f32 %v2844_v37, 0.0 }
 0x241   :  { %v2845_v30 = vpop.f32.mrf.mxu3 }
 0x242   :  { %v2846_v4 = vadd.f32 %v2845_v30, %v2832_v2 }
 0x244   :  { %v2908_v6 = vmax.f32 %v2846_v4, 0.0 }
 0x246   :  { %v2911_v7 = vpack.c.bf16 %v2908_v6, %v2905_v57 }
 0x248   :  { %3131 = vmatmul.bf16.vlgmr.msrb.gmra.mxu1 %v2911_v7 }
 0x249   :  { %v2899_v12 = vpop.f32.mrf.mxu3 }
 0x24a   :  { %v2900_v21 = vadd.f32 %v2899_v12, %v2886_v40 }
 0x24c   :  { %v2906_v23 = vmax.f32 %v2900_v21, 0.0 }
 0x251   :  { %v2901_v36 = vpop.f32.mrf.mxu3 }
 0x252   :  { %v2902_v22 = vadd.f32 %v2901_v36, %v2888_v20 }
 0x254   :  { %v2909_v24 = vmax.f32 %v2902_v22, 0.0 }
 0x256   :  { %v2912_v62 = vpack.c.bf16 %v2909_v24, %v2906_v23 }
 0x258   :  { %3145 = vmatmul.bf16.vlgmr.msrb.gmra.mxu2 %v2912_v62 }
 0x2b5   :  { %v3118_v32 = vpop.f32.mrf.mxu0 }
 0x2b6   :  { %v3119_v18 = vadd.f32 %v5045_v25, %v3118_v32 }
 0x2bd   :  { %v3120_v35 = vpop.f32.mrf.mxu0 }
 0x2be   :  { %v3121_v45 = vadd.f32 %v5045_v25, %v3120_v35 }
 0x2c5   :  { %v3132_v26 = vpop.f32.mrf.mxu1 }
 0x2c6   :  { %v3133_v29 = vadd.f32 %v3132_v26, %v3119_v18 }
 0x2cd   :  { %v3134_v3 = vpop.f32.mrf.mxu1 }
 0x2ce   :  { %v3135_v42 = vadd.f32 %v3134_v3, %v3121_v45 }
 0x2db   :  { %v3146_v31 = vpop.f32.mrf.mxu2 }
 0x2dc   :  { %v3147_v34 = vadd.f32 %v3146_v31, %v3133_v29 }
 0x2de   :  { %3151 = vst [vmem:[%s5409_s7] sm:$0xff] %v3147_v34 }
 0x2e3   :  { %v3148_v48 = vpop.f32.mrf.mxu2 }
 0x2e4   :  { %v3149_v27 = vadd.f32 %v3148_v48, %v3135_v42 }
 0x2e6   :  { %3152 = vst [vmem:[%s5409_s7 + $0x8] sm:$0xff] %v3149_v27 }
 0x2e7   :  { %3157 = vsyncpa [#allocation3], 1 }
 0x2e8   :  { %3158 = vsyncpa [#allocation5], 1 }

</bundles_post_ra>
